<compile_context>
chip_gen: v5e
topology: v5e:2x2
jax: 0.10.0
libtpu: 0.0.40
codegen_flags: <defaults>
</compile_context>

<pallas_src>
import functools

import jax
import jax.numpy as jnp
from jax.experimental import pallas as pl
from jax.experimental.pallas import tpu as pltpu


def _round_up(x, m):
    return ((x + m - 1) // m) * m


# ----------------------------- Pallas kernel --------------------------------


def rnn_survival_kernel(gi_ref, lens_ref, whh_ref, bhh_n_ref,
                        w1_ref, b1_ref, w2_ref, b2_ref, out_ref, h_ref,
                        *, chunk_len, total_steps, hidden_size):
    """Fused bidirectional GRU recurrence (one T-chunk) + MLP head.

    gi_ref:    (3, tT, tB, 2H)  precomputed input-gate activations [r,z,n],
               direction-fused columns [fwd | bwd(time-reversed)].
    lens_ref:  (tB, 1) int32    sequence lengths (padded rows have 0).
    whh_ref:   (2H, 3*2H) bf16  fused per-gate block-diagonal hidden weights.
    bhh_n_ref: (1, 2H)          hidden bias of the n gate (fwd | bwd).
    w1/b1:     (2H, L), (1, L)  first head layer.
    w2/b2:     (1, L), (1, 1)   second head layer (applied as VPU mul+reduce).
    out_ref:   (tB, 1)
    h_ref:     (tB, 2H) f32     VMEM scratch carrying h across T-chunks.
    """
    H = hidden_size
    H2 = 2 * H
    tB = h_ref.shape[0]
    k = pl.program_id(1)

    @pl.when(k == 0)
    def _():
        h_ref[...] = jnp.zeros_like(h_ref)

    # Hoisted (trace-once) values: no per-step broadcasts on the serial chain.
    whh = whh_ref[...]                                         # (2H, 6H) bf16
    bhh_n = jnp.broadcast_to(bhh_n_ref[...], (tB, H2))         # (tB, 2H)
    lens = lens_ref[...]                                        # (tB, 1) int32
    col_is_fwd = jax.lax.broadcasted_iota(jnp.int32, (1, H2), 1) < H

    h = h_ref[...]
    t0 = k * chunk_len
    # Short, statically unrolled chunk loop (chunk_len is bounded by the grid).
    for lt in range(chunk_len):
        t = t0 + lt
        # ONE fused MXU pass per step: gh = [gh_r | gh_z | gh_n], (tB, 6H).
        gh = jnp.dot(h.astype(jnp.bfloat16), whh,
                     preferred_element_type=jnp.float32)
        r = jax.nn.sigmoid(gi_ref[0, lt] + gh[:, 0:H2])
        z = jax.nn.sigmoid(gi_ref[1, lt] + gh[:, H2:2 * H2])
        n = jnp.tanh(gi_ref[2, lt] + r * (gh[:, 2 * H2:3 * H2] + bhh_n))
        h_new = n + z * (h - n)                                # (1-z)*n + z*h
        # In-kernel update mask: fwd columns use step t, bwd columns T-1-t.
        t_eff = jnp.where(col_is_fwd, t, total_steps - 1 - t)  # (1, 2H)
        h = jnp.where(lens > t_eff, h_new, h)                  # select: NaN-safe
    h_ref[...] = h

    @pl.when(k == pl.num_programs(1) - 1)
    def _():
        # last_hidden_state = cat(hn[-2], hn[-1]) == h (columns [fwd | bwd]).
        h1 = jnp.maximum(
            jnp.dot(h, w1_ref[...], preferred_element_type=jnp.float32)
            + b1_ref[...], 0.0)
        # (B,L)@(L,1) replaced by VPU multiply + lane reduction (no N=1 MXU pass).
        h2 = jnp.maximum(
            jnp.sum(h1 * w2_ref[...], axis=-1, keepdims=True) + b2_ref[...],
            0.0)
        # TODO(synk): nn.Dropout is identity in eval mode; no dropout mask applied.
        out_ref[...] = jax.nn.sigmoid(h2) * 100.0


# ------------------------------- wrapper -------------------------------------


@functools.partial(jax.jit, static_argnames=("hidden_size",))
def rnn_survival_predictor(sequence, sequence_length, site_features, params,
                           hidden_size):
    """Equivalent of RNNSurvivalPredictor.forward (GRU, concat_features=False).

    sequence:        (B, T, input_size) float32, batch-first (PyTorch layout)
    sequence_length: (B,) int
    site_features:   (B, site_features_size)  -- unused (concat_features=False)
    Returns (B,) float32.
    """
    del site_features  # concat_features=False: static features are not used.
    B, T, _ = sequence.shape
    H = hidden_size
    H2 = 2 * H
    L = params["w1"].shape[0]

    # ---- tiling: pad batch to sublane multiple, chunk time for pipelining ----
    if B <= 128:
        tB = _round_up(B, 8)
        B_pad = tB
    else:
        tB = 128
        B_pad = _round_up(B, tB)
    tT = T if T <= 32 else 32
    T_pad = _round_up(T, tT)

    seq = jnp.pad(sequence.astype(jnp.float32),
                  ((0, B_pad - B), (0, T_pad - T), (0, 0)))
    lens = jnp.pad(sequence_length.astype(jnp.int32), (0, B_pad - B))
    lens = lens.reshape(B_pad, 1)

    # ---- hoisted input projection (one big matmul per direction, in XLA) ----
    def input_proj(w_ih, b_ih, b_hh):
        # Fold b_ih everywhere and b_hh into the r/z gate columns (the n-gate
        # b_hh term must stay inside the loop since r multiplies it).
        bias = jnp.concatenate([b_ih[:2 * H] + b_hh[:2 * H], b_ih[2 * H:]])
        # (B,T,D) x (3H,D) -> time-major (T,B,3H), gate order [r,z,n].
        return jnp.einsum("btd,gd->tbg", seq, w_ih.astype(jnp.float32)) + bias

    gi_f = input_proj(params["w_ih_f"], params["b_ih_f"], params["b_hh_f"])
    gi_b = input_proj(params["w_ih_b"], params["b_ih_b"], params["b_hh_b"])[::-1]

    # Per-gate, direction-fused gi slabs: (3, T_pad, B_pad, 2H).
    gi_all = jnp.stack([
        jnp.concatenate([gi_f[..., 0:H], gi_b[..., 0:H]], axis=-1),
        jnp.concatenate([gi_f[..., H:2 * H], gi_b[..., H:2 * H]], axis=-1),
        jnp.concatenate([gi_f[..., 2 * H:], gi_b[..., 2 * H:]], axis=-1),
    ])

    # Fused hidden weights: one (2H, 3*2H) matrix = [Wr | Wz | Wn], each gate a
    # block-diagonal [fwd | bwd]. bf16 operands, f32 accumulation in-kernel.
    def block_diag(a, b):
        return jnp.block([[a, jnp.zeros((a.shape[0], b.shape[1]), jnp.float32)],
                          [jnp.zeros((b.shape[0], a.shape[1]), jnp.float32), b]])

    whh_fused = jnp.concatenate([
        block_diag(params["w_hh_f"][0:H].T, params["w_hh_b"][0:H].T),
        block_diag(params["w_hh_f"][H:2 * H].T, params["w_hh_b"][H:2 * H].T),
        block_diag(params["w_hh_f"][2 * H:].T, params["w_hh_b"][2 * H:].T),
    ], axis=1).astype(jnp.bfloat16)
    bhh_n = jnp.concatenate([params["b_hh_f"][2 * H:],
                             params["b_hh_b"][2 * H:]]).reshape(1, H2)

    kernel_inputs = (
        gi_all, lens, whh_fused, bhh_n,
        params["w1"].T, params["b1"].reshape(1, L),
        params["w2"].reshape(1, L), params["b2"].reshape(1, 1),
    )

    grid = (B_pad // tB, T_pad // tT)
    out = pl.pallas_call(
        functools.partial(rnn_survival_kernel, chunk_len=tT,
                          total_steps=T_pad, hidden_size=H),
        out_shape=jax.ShapeDtypeStruct((B_pad, 1), jnp.float32),
        grid_spec=pltpu.PrefetchScalarGridSpec(
            num_scalar_prefetch=0,
            grid=grid,
            in_specs=[
                pl.BlockSpec((3, tT, tB, H2), lambda b, k: (0, k, b, 0)),
                pl.BlockSpec((tB, 1), lambda b, k: (b, 0)),
                pl.BlockSpec((H2, 3 * H2), lambda b, k: (0, 0)),
                pl.BlockSpec((1, H2), lambda b, k: (0, 0)),
                pl.BlockSpec((H2, L), lambda b, k: (0, 0)),
                pl.BlockSpec((1, L), lambda b, k: (0, 0)),
                pl.BlockSpec((1, L), lambda b, k: (0, 0)),
                pl.BlockSpec((1, 1), lambda b, k: (0, 0)),
            ],
            out_specs=pl.BlockSpec((tB, 1), lambda b, k: (b, 0)),
            scratch_shapes=[pltpu.VMEM((tB, H2), jnp.float32)],
        ),
        compiler_params=pltpu.CompilerParams(
            dimension_semantics=("parallel", "arbitrary"),
            vmem_limit_bytes=32 * 1024 * 1024),
    )(*kernel_inputs)
    return out[:B, 0]  # .squeeze()


# --------------------------- pure-JAX reference -------------------------------


def reference_forward(sequence, sequence_length, params, H):
    B, T, _ = sequence.shape
    lens = sequence_length.astype(jnp.float32).reshape(B, 1)

    def cell(x, h, w_ih, w_hh, b_ih, b_hh):
        gi = x @ w_ih.T + b_ih
        gh = h @ w_hh.T + b_hh
        r = jax.nn.sigmoid(gi[:, :H] + gh[:, :H])
        z = jax.nn.sigmoid(gi[:, H:2 * H] + gh[:, H:2 * H])
        n = jnp.tanh(gi[:, 2 * H:] + r * gh[:, 2 * H:])
        return (1 - z) * n + z * h

    h_f = jnp.zeros((B, H), jnp.float32)
    for t in range(T):
        h_new = cell(sequence[:, t], h_f, params["w_ih_f"], params["w_hh_f"],
                     params["b_ih_f"], params["b_hh_f"])
        m = (lens > t).astype(jnp.float32)
        h_f = m * h_new + (1 - m) * h_f

    h_b = jnp.zeros((B, H), jnp.float32)
    for t in range(T - 1, -1, -1):
        h_new = cell(sequence[:, t], h_b, params["w_ih_b"], params["w_hh_b"],
                     params["b_ih_b"], params["b_hh_b"])
        m = (lens > t).astype(jnp.float32)
        h_b = m * h_new + (1 - m) * h_b

    feat = jnp.concatenate([h_f, h_b], axis=1)
    h1 = jnp.maximum(feat @ params["w1"].T + params["b1"], 0.0)
    h2 = jnp.maximum(h1 @ params["w2"].T + params["b2"], 0.0)
    return (jax.nn.sigmoid(h2) * 100.0).reshape(B)


# --------------------------------- main ---------------------------------------


if __name__ == "__main__":
    INPUT_SIZE = 16
    HIDDEN_SIZE = 32
    LINEAR_SIZE = 64
    SITE_FEATURES_SIZE = 8
    B, T = 2, 8

    key = jax.random.PRNGKey(0)
    keys = jax.random.split(key, 16)

    k_rnn = 1.0 / jnp.sqrt(HIDDEN_SIZE)
    k_l1 = 1.0 / jnp.sqrt(2 * HIDDEN_SIZE)
    k_l2 = 1.0 / jnp.sqrt(LINEAR_SIZE)

    def u(k, shape, scale):
        return jax.random.uniform(k, shape, jnp.float32, -scale, scale)

    params = {
        # forward-direction GRU weights (PyTorch gate order: r, z, n)
        "w_ih_f": u(keys[0], (3 * HIDDEN_SIZE, INPUT_SIZE), k_rnn),
        "w_hh_f": u(keys[1], (3 * HIDDEN_SIZE, HIDDEN_SIZE), k_rnn),
        "b_ih_f": u(keys[2], (3 * HIDDEN_SIZE,), k_rnn),
        "b_hh_f": u(keys[3], (3 * HIDDEN_SIZE,), k_rnn),
        # reverse-direction GRU weights
        "w_ih_b": u(keys[4], (3 * HIDDEN_SIZE, INPUT_SIZE), k_rnn),
        "w_hh_b": u(keys[5], (3 * HIDDEN_SIZE, HIDDEN_SIZE), k_rnn),
        "b_ih_b": u(keys[6], (3 * HIDDEN_SIZE,), k_rnn),
        "b_hh_b": u(keys[7], (3 * HIDDEN_SIZE,), k_rnn),
        # linear_sequence: Linear(2H, L), ReLU, Linear(L, 1), ReLU
        "w1": u(keys[8], (LINEAR_SIZE, 2 * HIDDEN_SIZE), k_l1),
        "b1": u(keys[9], (LINEAR_SIZE,), k_l1),
        "w2": u(keys[10], (1, LINEAR_SIZE), k_l2),
        "b2": u(keys[11], (1,), k_l2),
    }

    sequence = jax.random.normal(keys[12], (B, T, INPUT_SIZE), jnp.float32)
    sequence_length = jnp.array([8, 5], dtype=jnp.int32)
    site_features = jax.random.normal(keys[13], (B, SITE_FEATURES_SIZE),
                                      jnp.float32)

    out = rnn_survival_predictor(sequence, sequence_length, site_features,
                                 params, HIDDEN_SIZE)
    out = jax.block_until_ready(out)

    ref = reference_forward(sequence, sequence_length, params, HIDDEN_SIZE)
    assert out.shape == (B,)
    assert jnp.allclose(out, ref, atol=5e-2, rtol=1e-2), (out, ref)

    print("KERNEL_OK")
</pallas_src>

<mosaic_0001>
module attributes {stable_mosaic.version = 11 : i64} {
  func.func @rnn_survival_kernel(%arg0: i32, %arg1: i32, %arg2: memref<3x8x8x64xf32, #tpu.memory_space<vmem>>, %arg3: memref<8x1xi32, #tpu.memory_space<vmem>>, %arg4: memref<64x192xbf16, #tpu.memory_space<vmem>>, %arg5: memref<1x64xf32, #tpu.memory_space<vmem>>, %arg6: memref<64x64xf32, #tpu.memory_space<vmem>>, %arg7: memref<1x64xf32, #tpu.memory_space<vmem>>, %arg8: memref<1x64xf32, #tpu.memory_space<vmem>>, %arg9: memref<1x1xf32, #tpu.memory_space<vmem>>, %arg10: memref<8x1xf32, #tpu.memory_space<vmem>>, %arg11: memref<8x64xf32, #tpu.memory_space<vmem>>) attributes {dimension_semantics = [#tpu.dimension_semantics<parallel>, #tpu.dimension_semantics<arbitrary>], iteration_bounds = array<i64: 1, 1>, scalar_prefetch = 0 : i64, scratch_operands = 1 : i64, tpu.core_type = #tpu.core_type<tc>, window_params = [{transform_indices = @transform_0, window_bounds = array<i64: 3, 8, 8, 64>}, {transform_indices = @transform_1, window_bounds = array<i64: 8, 1>}, {pipeline_mode = #tpu.pipeline_mode<synchronous>, transform_indices = @transform_2, window_bounds = array<i64: 64, 192>}, {pipeline_mode = #tpu.pipeline_mode<synchronous>, transform_indices = @transform_3, window_bounds = array<i64: 1, 64>}, {pipeline_mode = #tpu.pipeline_mode<synchronous>, transform_indices = @transform_4, window_bounds = array<i64: 64, 64>}, {pipeline_mode = #tpu.pipeline_mode<synchronous>, transform_indices = @transform_5, window_bounds = array<i64: 1, 64>}, {pipeline_mode = #tpu.pipeline_mode<synchronous>, transform_indices = @transform_6, window_bounds = array<i64: 1, 64>}, {pipeline_mode = #tpu.pipeline_mode<synchronous>, transform_indices = @transform_7, window_bounds = array<i64: 1, 1>}, {transform_indices = @transform_8, window_bounds = array<i64: 8, 1>}]} {
    %c0_i32 = arith.constant 0 : i32
    %0 = arith.cmpi eq, %arg1, %c0_i32 : i32
    %1 = arith.extui %0 : i1 to i32
    %c0_i32_0 = arith.constant 0 : i32
    %2 = arith.cmpi ne, %1, %c0_i32_0 : i32
    scf.if %2 {
      %cst_133 = arith.constant 0.000000e+00 : f32
      %329 = vector.broadcast %cst_133 : f32 to vector<8x64xf32>
      %c0_134 = arith.constant 0 : index
      %c0_135 = arith.constant 0 : index
      %330 = vector.load %arg11[%c0_134, %c0_135] : memref<8x64xf32, #tpu.memory_space<vmem>>, vector<8x64xf32>
      tpu.vector_store %arg11[%c0_134, %c0_135], %329 {strides = array<i32>} : memref<8x64xf32, #tpu.memory_space<vmem>>, vector<8x64xf32>,
    } else {
    }
    %c0 = arith.constant 0 : index
    %c0_1 = arith.constant 0 : index
    %3 = vector.load %arg4[%c0, %c0_1] : memref<64x192xbf16, #tpu.memory_space<vmem>>, vector<64x192xbf16>
    %c0_2 = arith.constant 0 : index
    %c0_3 = arith.constant 0 : index
    %4 = vector.load %arg5[%c0_2, %c0_3] : memref<1x64xf32, #tpu.memory_space<vmem>>, vector<1x64xf32>
    %5 = vector.shape_cast %4 : vector<1x64xf32> to vector<1x64xf32>
    %6 = vector.broadcast %5 : vector<1x64xf32> to vector<8x64xf32>
    %c0_4 = arith.constant 0 : index
    %c0_5 = arith.constant 0 : index
    %7 = vector.load %arg3[%c0_4, %c0_5] : memref<8x1xi32, #tpu.memory_space<vmem>>, vector<8x1xi32>
    %8 = tpu.iota {dimensions = array<i32: 1>} : vector<1x64xi32>
    %c32_i32 = arith.constant 32 : i32
    %9 = vector.broadcast %c32_i32 : i32 to vector<1x64xi32>
    %10 = arith.cmpi slt, %8, %9 : vector<1x64xi32>
    %c0_6 = arith.constant 0 : index
    %c0_7 = arith.constant 0 : index
    %11 = vector.load %arg11[%c0_6, %c0_7] : memref<8x64xf32, #tpu.memory_space<vmem>>, vector<8x64xf32>
    %c8_i32 = arith.constant 8 : i32
    %12 = arith.muli %arg1, %c8_i32 : i32
    %c0_i32_8 = arith.constant 0 : i32
    %13 = arith.addi %12, %c0_i32_8 : i32
    %14 = arith.truncf %11 : vector<8x64xf32> to vector<8x64xbf16>
    %cst = arith.constant dense<0.000000e+00> : vector<8x192xf32>
    %15 = tpu.matmul %14, %3, %cst {dimension_numbers = #tpu.dot_dimension_numbers<[1], [0], [0], [1], [0, 0, 1, 1], [], []>} : vector<8x64xbf16>, vector<64x192xbf16>, vector<8x192xf32> -> vector<8x192xf32>
    %c0_9 = arith.constant 0 : index
    %c0_10 = arith.constant 0 : index
    %c0_11 = arith.constant 0 : index
    %c0_12 = arith.constant 0 : index
    %16 = vector.load %arg2[%c0_9, %c0_10, %c0_11, %c0_12] : memref<3x8x8x64xf32, #tpu.memory_space<vmem>>, vector<1x1x8x64xf32>
    %17 = vector.shape_cast %16 : vector<1x1x8x64xf32> to vector<8x64xf32>
    %18 = vector.extract_strided_slice %15 {offsets = [0, 0], sizes = [8, 64], strides = [1, 1]} : vector<8x192xf32> to vector<8x64xf32>
    %19 = arith.addf %17, %18 : vector<8x64xf32>
    %20 = arith.negf %19 : vector<8x64xf32>
    %21 = math.exp %20 : vector<8x64xf32>
    %cst_13 = arith.constant 1.000000e+00 : f32
    %22 = vector.broadcast %cst_13 : f32 to vector<8x64xf32>
    %23 = arith.addf %22, %21 : vector<8x64xf32>
    %24 = arith.divf %22, %23 : vector<8x64xf32>
    %c1 = arith.constant 1 : index
    %c0_14 = arith.constant 0 : index
    %c0_15 = arith.constant 0 : index
    %c0_16 = arith.constant 0 : index
    %25 = vector.load %arg2[%c1, %c0_14, %c0_15, %c0_16] : memref<3x8x8x64xf32, #tpu.memory_space<vmem>>, vector<1x1x8x64xf32>
    %26 = vector.shape_cast %25 : vector<1x1x8x64xf32> to vector<8x64xf32>
    %27 = vector.extract_strided_slice %15 {offsets = [0, 64], sizes = [8, 64], strides = [1, 1]} : vector<8x192xf32> to vector<8x64xf32>
    %28 = arith.addf %26, %27 : vector<8x64xf32>
    %29 = arith.negf %28 : vector<8x64xf32>
    %30 = math.exp %29 : vector<8x64xf32>
    %cst_17 = arith.constant 1.000000e+00 : f32
    %31 = vector.broadcast %cst_17 : f32 to vector<8x64xf32>
    %32 = arith.addf %31, %30 : vector<8x64xf32>
    %33 = arith.divf %31, %32 : vector<8x64xf32>
    %c2 = arith.constant 2 : index
    %c0_18 = arith.constant 0 : index
    %c0_19 = arith.constant 0 : index
    %c0_20 = arith.constant 0 : index
    %34 = vector.load %arg2[%c2, %c0_18, %c0_19, %c0_20] : memref<3x8x8x64xf32, #tpu.memory_space<vmem>>, vector<1x1x8x64xf32>
    %35 = vector.shape_cast %34 : vector<1x1x8x64xf32> to vector<8x64xf32>
    %36 = vector.extract_strided_slice %15 {offsets = [0, 128], sizes = [8, 64], strides = [1, 1]} : vector<8x192xf32> to vector<8x64xf32>
    %37 = arith.addf %36, %6 : vector<8x64xf32>
    %38 = arith.mulf %24, %37 : vector<8x64xf32>
    %39 = arith.addf %35, %38 : vector<8x64xf32>
    %40 = math.tanh %39 : vector<8x64xf32>
    %41 = arith.subf %11, %40 : vector<8x64xf32>
    %42 = arith.mulf %33, %41 : vector<8x64xf32>
    %43 = arith.addf %40, %42 : vector<8x64xf32>
    %c7_i32 = arith.constant 7 : i32
    %44 = arith.subi %c7_i32, %13 : i32
    %45 = vector.broadcast %13 : i32 to vector<1x64xi32>
    %46 = vector.broadcast %44 : i32 to vector<1x64xi32>
    %47 = arith.select %10, %45, %46 : vector<1x64xi1>, vector<1x64xi32>
    %48 = vector.broadcast %7 : vector<8x1xi32> to vector<8x64xi32>
    %49 = vector.broadcast %47 : vector<1x64xi32> to vector<8x64xi32>
    %50 = arith.cmpi sgt, %48, %49 : vector<8x64xi32>
    %51 = arith.select %50, %43, %11 : vector<8x64xi1>, vector<8x64xf32>
    %c1_i32 = arith.constant 1 : i32
    %52 = arith.addi %12, %c1_i32 : i32
    %53 = arith.truncf %51 : vector<8x64xf32> to vector<8x64xbf16>
    %cst_21 = arith.constant dense<0.000000e+00> : vector<8x192xf32>
    %54 = tpu.matmul %53, %3, %cst_21 {dimension_numbers = #tpu.dot_dimension_numbers<[1], [0], [0], [1], [0, 0, 1, 1], [], []>} : vector<8x64xbf16>, vector<64x192xbf16>, vector<8x192xf32> -> vector<8x192xf32>
    %c0_22 = arith.constant 0 : index
    %c1_23 = arith.constant 1 : index
    %c0_24 = arith.constant 0 : index
    %c0_25 = arith.constant 0 : index
    %55 = vector.load %arg2[%c0_22, %c1_23, %c0_24, %c0_25] : memref<3x8x8x64xf32, #tpu.memory_space<vmem>>, vector<1x1x8x64xf32>
    %56 = vector.shape_cast %55 : vector<1x1x8x64xf32> to vector<8x64xf32>
    %57 = vector.extract_strided_slice %54 {offsets = [0, 0], sizes = [8, 64], strides = [1, 1]} : vector<8x192xf32> to vector<8x64xf32>
    %58 = arith.addf %56, %57 : vector<8x64xf32>
    %59 = arith.negf %58 : vector<8x64xf32>
    %60 = math.exp %59 : vector<8x64xf32>
    %cst_26 = arith.constant 1.000000e+00 : f32
    %61 = vector.broadcast %cst_26 : f32 to vector<8x64xf32>
    %62 = arith.addf %61, %60 : vector<8x64xf32>
    %63 = arith.divf %61, %62 : vector<8x64xf32>
    %c1_27 = arith.constant 1 : index
    %c1_28 = arith.constant 1 : index
    %c0_29 = arith.constant 0 : index
    %c0_30 = arith.constant 0 : index
    %64 = vector.load %arg2[%c1_27, %c1_28, %c0_29, %c0_30] : memref<3x8x8x64xf32, #tpu.memory_space<vmem>>, vector<1x1x8x64xf32>
    %65 = vector.shape_cast %64 : vector<1x1x8x64xf32> to vector<8x64xf32>
    %66 = vector.extract_strided_slice %54 {offsets = [0, 64], sizes = [8, 64], strides = [1, 1]} : vector<8x192xf32> to vector<8x64xf32>
    %67 = arith.addf %65, %66 : vector<8x64xf32>
    %68 = arith.negf %67 : vector<8x64xf32>
    %69 = math.exp %68 : vector<8x64xf32>
    %cst_31 = arith.constant 1.000000e+00 : f32
    %70 = vector.broadcast %cst_31 : f32 to vector<8x64xf32>
    %71 = arith.addf %70, %69 : vector<8x64xf32>
    %72 = arith.divf %70, %71 : vector<8x64xf32>
    %c2_32 = arith.constant 2 : index
    %c1_33 = arith.constant 1 : index
    %c0_34 = arith.constant 0 : index
    %c0_35 = arith.constant 0 : index
    %73 = vector.load %arg2[%c2_32, %c1_33, %c0_34, %c0_35] : memref<3x8x8x64xf32, #tpu.memory_space<vmem>>, vector<1x1x8x64xf32>
    %74 = vector.shape_cast %73 : vector<1x1x8x64xf32> to vector<8x64xf32>
    %75 = vector.extract_strided_slice %54 {offsets = [0, 128], sizes = [8, 64], strides = [1, 1]} : vector<8x192xf32> to vector<8x64xf32>
    %76 = arith.addf %75, %6 : vector<8x64xf32>
    %77 = arith.mulf %63, %76 : vector<8x64xf32>
    %78 = arith.addf %74, %77 : vector<8x64xf32>
    %79 = math.tanh %78 : vector<8x64xf32>
    %80 = arith.subf %51, %79 : vector<8x64xf32>
    %81 = arith.mulf %72, %80 : vector<8x64xf32>
    %82 = arith.addf %79, %81 : vector<8x64xf32>
    %c7_i32_36 = arith.constant 7 : i32
    %83 = arith.subi %c7_i32_36, %52 : i32
    %84 = vector.broadcast %52 : i32 to vector<1x64xi32>
    %85 = vector.broadcast %83 : i32 to vector<1x64xi32>
    %86 = arith.select %10, %84, %85 : vector<1x64xi1>, vector<1x64xi32>
    %87 = vector.broadcast %7 : vector<8x1xi32> to vector<8x64xi32>
    %88 = vector.broadcast %86 : vector<1x64xi32> to vector<8x64xi32>
    %89 = arith.cmpi sgt, %87, %88 : vector<8x64xi32>
    %90 = arith.select %89, %82, %51 : vector<8x64xi1>, vector<8x64xf32>
    %c2_i32 = arith.constant 2 : i32
    %91 = arith.addi %12, %c2_i32 : i32
    %92 = arith.truncf %90 : vector<8x64xf32> to vector<8x64xbf16>
    %cst_37 = arith.constant dense<0.000000e+00> : vector<8x192xf32>
    %93 = tpu.matmul %92, %3, %cst_37 {dimension_numbers = #tpu.dot_dimension_numbers<[1], [0], [0], [1], [0, 0, 1, 1], [], []>} : vector<8x64xbf16>, vector<64x192xbf16>, vector<8x192xf32> -> vector<8x192xf32>
    %c0_38 = arith.constant 0 : index
    %c2_39 = arith.constant 2 : index
    %c0_40 = arith.constant 0 : index
    %c0_41 = arith.constant 0 : index
    %94 = vector.load %arg2[%c0_38, %c2_39, %c0_40, %c0_41] : memref<3x8x8x64xf32, #tpu.memory_space<vmem>>, vector<1x1x8x64xf32>
    %95 = vector.shape_cast %94 : vector<1x1x8x64xf32> to vector<8x64xf32>
    %96 = vector.extract_strided_slice %93 {offsets = [0, 0], sizes = [8, 64], strides = [1, 1]} : vector<8x192xf32> to vector<8x64xf32>
    %97 = arith.addf %95, %96 : vector<8x64xf32>
    %98 = arith.negf %97 : vector<8x64xf32>
    %99 = math.exp %98 : vector<8x64xf32>
    %cst_42 = arith.constant 1.000000e+00 : f32
    %100 = vector.broadcast %cst_42 : f32 to vector<8x64xf32>
    %101 = arith.addf %100, %99 : vector<8x64xf32>
    %102 = arith.divf %100, %101 : vector<8x64xf32>
    %c1_43 = arith.constant 1 : index
    %c2_44 = arith.constant 2 : index
    %c0_45 = arith.constant 0 : index
    %c0_46 = arith.constant 0 : index
    %103 = vector.load %arg2[%c1_43, %c2_44, %c0_45, %c0_46] : memref<3x8x8x64xf32, #tpu.memory_space<vmem>>, vector<1x1x8x64xf32>
    %104 = vector.shape_cast %103 : vector<1x1x8x64xf32> to vector<8x64xf32>
    %105 = vector.extract_strided_slice %93 {offsets = [0, 64], sizes = [8, 64], strides = [1, 1]} : vector<8x192xf32> to vector<8x64xf32>
    %106 = arith.addf %104, %105 : vector<8x64xf32>
    %107 = arith.negf %106 : vector<8x64xf32>
    %108 = math.exp %107 : vector<8x64xf32>
    %cst_47 = arith.constant 1.000000e+00 : f32
    %109 = vector.broadcast %cst_47 : f32 to vector<8x64xf32>
    %110 = arith.addf %109, %108 : vector<8x64xf32>
    %111 = arith.divf %109, %110 : vector<8x64xf32>
    %c2_48 = arith.constant 2 : index
    %c2_49 = arith.constant 2 : index
    %c0_50 = arith.constant 0 : index
    %c0_51 = arith.constant 0 : index
    %112 = vector.load %arg2[%c2_48, %c2_49, %c0_50, %c0_51] : memref<3x8x8x64xf32, #tpu.memory_space<vmem>>, vector<1x1x8x64xf32>
    %113 = vector.shape_cast %112 : vector<1x1x8x64xf32> to vector<8x64xf32>
    %114 = vector.extract_strided_slice %93 {offsets = [0, 128], sizes = [8, 64], strides = [1, 1]} : vector<8x192xf32> to vector<8x64xf32>
    %115 = arith.addf %114, %6 : vector<8x64xf32>
    %116 = arith.mulf %102, %115 : vector<8x64xf32>
    %117 = arith.addf %113, %116 : vector<8x64xf32>
    %118 = math.tanh %117 : vector<8x64xf32>
    %119 = arith.subf %90, %118 : vector<8x64xf32>
    %120 = arith.mulf %111, %119 : vector<8x64xf32>
    %121 = arith.addf %118, %120 : vector<8x64xf32>
    %c7_i32_52 = arith.constant 7 : i32
    %122 = arith.subi %c7_i32_52, %91 : i32
    %123 = vector.broadcast %91 : i32 to vector<1x64xi32>
    %124 = vector.broadcast %122 : i32 to vector<1x64xi32>
    %125 = arith.select %10, %123, %124 : vector<1x64xi1>, vector<1x64xi32>
    %126 = vector.broadcast %7 : vector<8x1xi32> to vector<8x64xi32>
    %127 = vector.broadcast %125 : vector<1x64xi32> to vector<8x64xi32>
    %128 = arith.cmpi sgt, %126, %127 : vector<8x64xi32>
    %129 = arith.select %128, %121, %90 : vector<8x64xi1>, vector<8x64xf32>
    %c3_i32 = arith.constant 3 : i32
    %130 = arith.addi %12, %c3_i32 : i32
    %131 = arith.truncf %129 : vector<8x64xf32> to vector<8x64xbf16>
    %cst_53 = arith.constant dense<0.000000e+00> : vector<8x192xf32>
    %132 = tpu.matmul %131, %3, %cst_53 {dimension_numbers = #tpu.dot_dimension_numbers<[1], [0], [0], [1], [0, 0, 1, 1], [], []>} : vector<8x64xbf16>, vector<64x192xbf16>, vector<8x192xf32> -> vector<8x192xf32>
    %c0_54 = arith.constant 0 : index
    %c3 = arith.constant 3 : index
    %c0_55 = arith.constant 0 : index
    %c0_56 = arith.constant 0 : index
    %133 = vector.load %arg2[%c0_54, %c3, %c0_55, %c0_56] : memref<3x8x8x64xf32, #tpu.memory_space<vmem>>, vector<1x1x8x64xf32>
    %134 = vector.shape_cast %133 : vector<1x1x8x64xf32> to vector<8x64xf32>
    %135 = vector.extract_strided_slice %132 {offsets = [0, 0], sizes = [8, 64], strides = [1, 1]} : vector<8x192xf32> to vector<8x64xf32>
    %136 = arith.addf %134, %135 : vector<8x64xf32>
    %137 = arith.negf %136 : vector<8x64xf32>
    %138 = math.exp %137 : vector<8x64xf32>
    %cst_57 = arith.constant 1.000000e+00 : f32
    %139 = vector.broadcast %cst_57 : f32 to vector<8x64xf32>
    %140 = arith.addf %139, %138 : vector<8x64xf32>
    %141 = arith.divf %139, %140 : vector<8x64xf32>
    %c1_58 = arith.constant 1 : index
    %c3_59 = arith.constant 3 : index
    %c0_60 = arith.constant 0 : index
    %c0_61 = arith.constant 0 : index
    %142 = vector.load %arg2[%c1_58, %c3_59, %c0_60, %c0_61] : memref<3x8x8x64xf32, #tpu.memory_space<vmem>>, vector<1x1x8x64xf32>
    %143 = vector.shape_cast %142 : vector<1x1x8x64xf32> to vector<8x64xf32>
    %144 = vector.extract_strided_slice %132 {offsets = [0, 64], sizes = [8, 64], strides = [1, 1]} : vector<8x192xf32> to vector<8x64xf32>
    %145 = arith.addf %143, %144 : vector<8x64xf32>
    %146 = arith.negf %145 : vector<8x64xf32>
    %147 = math.exp %146 : vector<8x64xf32>
    %cst_62 = arith.constant 1.000000e+00 : f32
    %148 = vector.broadcast %cst_62 : f32 to vector<8x64xf32>
    %149 = arith.addf %148, %147 : vector<8x64xf32>
    %150 = arith.divf %148, %149 : vector<8x64xf32>
    %c2_63 = arith.constant 2 : index
    %c3_64 = arith.constant 3 : index
    %c0_65 = arith.constant 0 : index
    %c0_66 = arith.constant 0 : index
    %151 = vector.load %arg2[%c2_63, %c3_64, %c0_65, %c0_66] : memref<3x8x8x64xf32, #tpu.memory_space<vmem>>, vector<1x1x8x64xf32>
    %152 = vector.shape_cast %151 : vector<1x1x8x64xf32> to vector<8x64xf32>
    %153 = vector.extract_strided_slice %132 {offsets = [0, 128], sizes = [8, 64], strides = [1, 1]} : vector<8x192xf32> to vector<8x64xf32>
    %154 = arith.addf %153, %6 : vector<8x64xf32>
    %155 = arith.mulf %141, %154 : vector<8x64xf32>
    %156 = arith.addf %152, %155 : vector<8x64xf32>
    %157 = math.tanh %156 : vector<8x64xf32>
    %158 = arith.subf %129, %157 : vector<8x64xf32>
    %159 = arith.mulf %150, %158 : vector<8x64xf32>
    %160 = arith.addf %157, %159 : vector<8x64xf32>
    %c7_i32_67 = arith.constant 7 : i32
    %161 = arith.subi %c7_i32_67, %130 : i32
    %162 = vector.broadcast %130 : i32 to vector<1x64xi32>
    %163 = vector.broadcast %161 : i32 to vector<1x64xi32>
    %164 = arith.select %10, %162, %163 : vector<1x64xi1>, vector<1x64xi32>
    %165 = vector.broadcast %7 : vector<8x1xi32> to vector<8x64xi32>
    %166 = vector.broadcast %164 : vector<1x64xi32> to vector<8x64xi32>
    %167 = arith.cmpi sgt, %165, %166 : vector<8x64xi32>
    %168 = arith.select %167, %160, %129 : vector<8x64xi1>, vector<8x64xf32>
    %c4_i32 = arith.constant 4 : i32
    %169 = arith.addi %12, %c4_i32 : i32
    %170 = arith.truncf %168 : vector<8x64xf32> to vector<8x64xbf16>
    %cst_68 = arith.constant dense<0.000000e+00> : vector<8x192xf32>
    %171 = tpu.matmul %170, %3, %cst_68 {dimension_numbers = #tpu.dot_dimension_numbers<[1], [0], [0], [1], [0, 0, 1, 1], [], []>} : vector<8x64xbf16>, vector<64x192xbf16>, vector<8x192xf32> -> vector<8x192xf32>
    %c0_69 = arith.constant 0 : index
    %c4 = arith.constant 4 : index
    %c0_70 = arith.constant 0 : index
    %c0_71 = arith.constant 0 : index
    %172 = vector.load %arg2[%c0_69, %c4, %c0_70, %c0_71] : memref<3x8x8x64xf32, #tpu.memory_space<vmem>>, vector<1x1x8x64xf32>
    %173 = vector.shape_cast %172 : vector<1x1x8x64xf32> to vector<8x64xf32>
    %174 = vector.extract_strided_slice %171 {offsets = [0, 0], sizes = [8, 64], strides = [1, 1]} : vector<8x192xf32> to vector<8x64xf32>
    %175 = arith.addf %173, %174 : vector<8x64xf32>
    %176 = arith.negf %175 : vector<8x64xf32>
    %177 = math.exp %176 : vector<8x64xf32>
    %cst_72 = arith.constant 1.000000e+00 : f32
    %178 = vector.broadcast %cst_72 : f32 to vector<8x64xf32>
    %179 = arith.addf %178, %177 : vector<8x64xf32>
    %180 = arith.divf %178, %179 : vector<8x64xf32>
    %c1_73 = arith.constant 1 : index
    %c4_74 = arith.constant 4 : index
    %c0_75 = arith.constant 0 : index
    %c0_76 = arith.constant 0 : index
    %181 = vector.load %arg2[%c1_73, %c4_74, %c0_75, %c0_76] : memref<3x8x8x64xf32, #tpu.memory_space<vmem>>, vector<1x1x8x64xf32>
    %182 = vector.shape_cast %181 : vector<1x1x8x64xf32> to vector<8x64xf32>
    %183 = vector.extract_strided_slice %171 {offsets = [0, 64], sizes = [8, 64], strides = [1, 1]} : vector<8x192xf32> to vector<8x64xf32>
    %184 = arith.addf %182, %183 : vector<8x64xf32>
    %185 = arith.negf %184 : vector<8x64xf32>
    %186 = math.exp %185 : vector<8x64xf32>
    %cst_77 = arith.constant 1.000000e+00 : f32
    %187 = vector.broadcast %cst_77 : f32 to vector<8x64xf32>
    %188 = arith.addf %187, %186 : vector<8x64xf32>
    %189 = arith.divf %187, %188 : vector<8x64xf32>
    %c2_78 = arith.constant 2 : index
    %c4_79 = arith.constant 4 : index
    %c0_80 = arith.constant 0 : index
    %c0_81 = arith.constant 0 : index
    %190 = vector.load %arg2[%c2_78, %c4_79, %c0_80, %c0_81] : memref<3x8x8x64xf32, #tpu.memory_space<vmem>>, vector<1x1x8x64xf32>
    %191 = vector.shape_cast %190 : vector<1x1x8x64xf32> to vector<8x64xf32>
    %192 = vector.extract_strided_slice %171 {offsets = [0, 128], sizes = [8, 64], strides = [1, 1]} : vector<8x192xf32> to vector<8x64xf32>
    %193 = arith.addf %192, %6 : vector<8x64xf32>
    %194 = arith.mulf %180, %193 : vector<8x64xf32>
    %195 = arith.addf %191, %194 : vector<8x64xf32>
    %196 = math.tanh %195 : vector<8x64xf32>
    %197 = arith.subf %168, %196 : vector<8x64xf32>
    %198 = arith.mulf %189, %197 : vector<8x64xf32>
    %199 = arith.addf %196, %198 : vector<8x64xf32>
    %c7_i32_82 = arith.constant 7 : i32
    %200 = arith.subi %c7_i32_82, %169 : i32
    %201 = vector.broadcast %169 : i32 to vector<1x64xi32>
    %202 = vector.broadcast %200 : i32 to vector<1x64xi32>
    %203 = arith.select %10, %201, %202 : vector<1x64xi1>, vector<1x64xi32>
    %204 = vector.broadcast %7 : vector<8x1xi32> to vector<8x64xi32>
    %205 = vector.broadcast %203 : vector<1x64xi32> to vector<8x64xi32>
    %206 = arith.cmpi sgt, %204, %205 : vector<8x64xi32>
    %207 = arith.select %206, %199, %168 : vector<8x64xi1>, vector<8x64xf32>
    %c5_i32 = arith.constant 5 : i32
    %208 = arith.addi %12, %c5_i32 : i32
    %209 = arith.truncf %207 : vector<8x64xf32> to vector<8x64xbf16>
    %cst_83 = arith.constant dense<0.000000e+00> : vector<8x192xf32>
    %210 = tpu.matmul %209, %3, %cst_83 {dimension_numbers = #tpu.dot_dimension_numbers<[1], [0], [0], [1], [0, 0, 1, 1], [], []>} : vector<8x64xbf16>, vector<64x192xbf16>, vector<8x192xf32> -> vector<8x192xf32>
    %c0_84 = arith.constant 0 : index
    %c5 = arith.constant 5 : index
    %c0_85 = arith.constant 0 : index
    %c0_86 = arith.constant 0 : index
    %211 = vector.load %arg2[%c0_84, %c5, %c0_85, %c0_86] : memref<3x8x8x64xf32, #tpu.memory_space<vmem>>, vector<1x1x8x64xf32>
    %212 = vector.shape_cast %211 : vector<1x1x8x64xf32> to vector<8x64xf32>
    %213 = vector.extract_strided_slice %210 {offsets = [0, 0], sizes = [8, 64], strides = [1, 1]} : vector<8x192xf32> to vector<8x64xf32>
    %214 = arith.addf %212, %213 : vector<8x64xf32>
    %215 = arith.negf %214 : vector<8x64xf32>
    %216 = math.exp %215 : vector<8x64xf32>
    %cst_87 = arith.constant 1.000000e+00 : f32
    %217 = vector.broadcast %cst_87 : f32 to vector<8x64xf32>
    %218 = arith.addf %217, %216 : vector<8x64xf32>
    %219 = arith.divf %217, %218 : vector<8x64xf32>
    %c1_88 = arith.constant 1 : index
    %c5_89 = arith.constant 5 : index
    %c0_90 = arith.constant 0 : index
    %c0_91 = arith.constant 0 : index
    %220 = vector.load %arg2[%c1_88, %c5_89, %c0_90, %c0_91] : memref<3x8x8x64xf32, #tpu.memory_space<vmem>>, vector<1x1x8x64xf32>
    %221 = vector.shape_cast %220 : vector<1x1x8x64xf32> to vector<8x64xf32>
    %222 = vector.extract_strided_slice %210 {offsets = [0, 64], sizes = [8, 64], strides = [1, 1]} : vector<8x192xf32> to vector<8x64xf32>
    %223 = arith.addf %221, %222 : vector<8x64xf32>
    %224 = arith.negf %223 : vector<8x64xf32>
    %225 = math.exp %224 : vector<8x64xf32>
    %cst_92 = arith.constant 1.000000e+00 : f32
    %226 = vector.broadcast %cst_92 : f32 to vector<8x64xf32>
    %227 = arith.addf %226, %225 : vector<8x64xf32>
    %228 = arith.divf %226, %227 : vector<8x64xf32>
    %c2_93 = arith.constant 2 : index
    %c5_94 = arith.constant 5 : index
    %c0_95 = arith.constant 0 : index
    %c0_96 = arith.constant 0 : index
    %229 = vector.load %arg2[%c2_93, %c5_94, %c0_95, %c0_96] : memref<3x8x8x64xf32, #tpu.memory_space<vmem>>, vector<1x1x8x64xf32>
    %230 = vector.shape_cast %229 : vector<1x1x8x64xf32> to vector<8x64xf32>
    %231 = vector.extract_strided_slice %210 {offsets = [0, 128], sizes = [8, 64], strides = [1, 1]} : vector<8x192xf32> to vector<8x64xf32>
    %232 = arith.addf %231, %6 : vector<8x64xf32>
    %233 = arith.mulf %219, %232 : vector<8x64xf32>
    %234 = arith.addf %230, %233 : vector<8x64xf32>
    %235 = math.tanh %234 : vector<8x64xf32>
    %236 = arith.subf %207, %235 : vector<8x64xf32>
    %237 = arith.mulf %228, %236 : vector<8x64xf32>
    %238 = arith.addf %235, %237 : vector<8x64xf32>
    %c7_i32_97 = arith.constant 7 : i32
    %239 = arith.subi %c7_i32_97, %208 : i32
    %240 = vector.broadcast %208 : i32 to vector<1x64xi32>
    %241 = vector.broadcast %239 : i32 to vector<1x64xi32>
    %242 = arith.select %10, %240, %241 : vector<1x64xi1>, vector<1x64xi32>
    %243 = vector.broadcast %7 : vector<8x1xi32> to vector<8x64xi32>
    %244 = vector.broadcast %242 : vector<1x64xi32> to vector<8x64xi32>
    %245 = arith.cmpi sgt, %243, %244 : vector<8x64xi32>
    %246 = arith.select %245, %238, %207 : vector<8x64xi1>, vector<8x64xf32>
    %c6_i32 = arith.constant 6 : i32
    %247 = arith.addi %12, %c6_i32 : i32
    %248 = arith.truncf %246 : vector<8x64xf32> to vector<8x64xbf16>
    %cst_98 = arith.constant dense<0.000000e+00> : vector<8x192xf32>
    %249 = tpu.matmul %248, %3, %cst_98 {dimension_numbers = #tpu.dot_dimension_numbers<[1], [0], [0], [1], [0, 0, 1, 1], [], []>} : vector<8x64xbf16>, vector<64x192xbf16>, vector<8x192xf32> -> vector<8x192xf32>
    %c0_99 = arith.constant 0 : index
    %c6 = arith.constant 6 : index
    %c0_100 = arith.constant 0 : index
    %c0_101 = arith.constant 0 : index
    %250 = vector.load %arg2[%c0_99, %c6, %c0_100, %c0_101] : memref<3x8x8x64xf32, #tpu.memory_space<vmem>>, vector<1x1x8x64xf32>
    %251 = vector.shape_cast %250 : vector<1x1x8x64xf32> to vector<8x64xf32>
    %252 = vector.extract_strided_slice %249 {offsets = [0, 0], sizes = [8, 64], strides = [1, 1]} : vector<8x192xf32> to vector<8x64xf32>
    %253 = arith.addf %251, %252 : vector<8x64xf32>
    %254 = arith.negf %253 : vector<8x64xf32>
    %255 = math.exp %254 : vector<8x64xf32>
    %cst_102 = arith.constant 1.000000e+00 : f32
    %256 = vector.broadcast %cst_102 : f32 to vector<8x64xf32>
    %257 = arith.addf %256, %255 : vector<8x64xf32>
    %258 = arith.divf %256, %257 : vector<8x64xf32>
    %c1_103 = arith.constant 1 : index
    %c6_104 = arith.constant 6 : index
    %c0_105 = arith.constant 0 : index
    %c0_106 = arith.constant 0 : index
    %259 = vector.load %arg2[%c1_103, %c6_104, %c0_105, %c0_106] : memref<3x8x8x64xf32, #tpu.memory_space<vmem>>, vector<1x1x8x64xf32>
    %260 = vector.shape_cast %259 : vector<1x1x8x64xf32> to vector<8x64xf32>
    %261 = vector.extract_strided_slice %249 {offsets = [0, 64], sizes = [8, 64], strides = [1, 1]} : vector<8x192xf32> to vector<8x64xf32>
    %262 = arith.addf %260, %261 : vector<8x64xf32>
    %263 = arith.negf %262 : vector<8x64xf32>
    %264 = math.exp %263 : vector<8x64xf32>
    %cst_107 = arith.constant 1.000000e+00 : f32
    %265 = vector.broadcast %cst_107 : f32 to vector<8x64xf32>
    %266 = arith.addf %265, %264 : vector<8x64xf32>
    %267 = arith.divf %265, %266 : vector<8x64xf32>
    %c2_108 = arith.constant 2 : index
    %c6_109 = arith.constant 6 : index
    %c0_110 = arith.constant 0 : index
    %c0_111 = arith.constant 0 : index
    %268 = vector.load %arg2[%c2_108, %c6_109, %c0_110, %c0_111] : memref<3x8x8x64xf32, #tpu.memory_space<vmem>>, vector<1x1x8x64xf32>
    %269 = vector.shape_cast %268 : vector<1x1x8x64xf32> to vector<8x64xf32>
    %270 = vector.extract_strided_slice %249 {offsets = [0, 128], sizes = [8, 64], strides = [1, 1]} : vector<8x192xf32> to vector<8x64xf32>
    %271 = arith.addf %270, %6 : vector<8x64xf32>
    %272 = arith.mulf %258, %271 : vector<8x64xf32>
    %273 = arith.addf %269, %272 : vector<8x64xf32>
    %274 = math.tanh %273 : vector<8x64xf32>
    %275 = arith.subf %246, %274 : vector<8x64xf32>
    %276 = arith.mulf %267, %275 : vector<8x64xf32>
    %277 = arith.addf %274, %276 : vector<8x64xf32>
    %c7_i32_112 = arith.constant 7 : i32
    %278 = arith.subi %c7_i32_112, %247 : i32
    %279 = vector.broadcast %247 : i32 to vector<1x64xi32>
    %280 = vector.broadcast %278 : i32 to vector<1x64xi32>
    %281 = arith.select %10, %279, %280 : vector<1x64xi1>, vector<1x64xi32>
    %282 = vector.broadcast %7 : vector<8x1xi32> to vector<8x64xi32>
    %283 = vector.broadcast %281 : vector<1x64xi32> to vector<8x64xi32>
    %284 = arith.cmpi sgt, %282, %283 : vector<8x64xi32>
    %285 = arith.select %284, %277, %246 : vector<8x64xi1>, vector<8x64xf32>
    %c7_i32_113 = arith.constant 7 : i32
    %286 = arith.addi %12, %c7_i32_113 : i32
    %287 = arith.truncf %285 : vector<8x64xf32> to vector<8x64xbf16>
    %cst_114 = arith.constant dense<0.000000e+00> : vector<8x192xf32>
    %288 = tpu.matmul %287, %3, %cst_114 {dimension_numbers = #tpu.dot_dimension_numbers<[1], [0], [0], [1], [0, 0, 1, 1], [], []>} : vector<8x64xbf16>, vector<64x192xbf16>, vector<8x192xf32> -> vector<8x192xf32>
    %c0_115 = arith.constant 0 : index
    %c7 = arith.constant 7 : index
    %c0_116 = arith.constant 0 : index
    %c0_117 = arith.constant 0 : index
    %289 = vector.load %arg2[%c0_115, %c7, %c0_116, %c0_117] : memref<3x8x8x64xf32, #tpu.memory_space<vmem>>, vector<1x1x8x64xf32>
    %290 = vector.shape_cast %289 : vector<1x1x8x64xf32> to vector<8x64xf32>
    %291 = vector.extract_strided_slice %288 {offsets = [0, 0], sizes = [8, 64], strides = [1, 1]} : vector<8x192xf32> to vector<8x64xf32>
    %292 = arith.addf %290, %291 : vector<8x64xf32>
    %293 = arith.negf %292 : vector<8x64xf32>
    %294 = math.exp %293 : vector<8x64xf32>
    %cst_118 = arith.constant 1.000000e+00 : f32
    %295 = vector.broadcast %cst_118 : f32 to vector<8x64xf32>
    %296 = arith.addf %295, %294 : vector<8x64xf32>
    %297 = arith.divf %295, %296 : vector<8x64xf32>
    %c1_119 = arith.constant 1 : index
    %c7_120 = arith.constant 7 : index
    %c0_121 = arith.constant 0 : index
    %c0_122 = arith.constant 0 : index
    %298 = vector.load %arg2[%c1_119, %c7_120, %c0_121, %c0_122] : memref<3x8x8x64xf32, #tpu.memory_space<vmem>>, vector<1x1x8x64xf32>
    %299 = vector.shape_cast %298 : vector<1x1x8x64xf32> to vector<8x64xf32>
    %300 = vector.extract_strided_slice %288 {offsets = [0, 64], sizes = [8, 64], strides = [1, 1]} : vector<8x192xf32> to vector<8x64xf32>
    %301 = arith.addf %299, %300 : vector<8x64xf32>
    %302 = arith.negf %301 : vector<8x64xf32>
    %303 = math.exp %302 : vector<8x64xf32>
    %cst_123 = arith.constant 1.000000e+00 : f32
    %304 = vector.broadcast %cst_123 : f32 to vector<8x64xf32>
    %305 = arith.addf %304, %303 : vector<8x64xf32>
    %306 = arith.divf %304, %305 : vector<8x64xf32>
    %c2_124 = arith.constant 2 : index
    %c7_125 = arith.constant 7 : index
    %c0_126 = arith.constant 0 : index
    %c0_127 = arith.constant 0 : index
    %307 = vector.load %arg2[%c2_124, %c7_125, %c0_126, %c0_127] : memref<3x8x8x64xf32, #tpu.memory_space<vmem>>, vector<1x1x8x64xf32>
    %308 = vector.shape_cast %307 : vector<1x1x8x64xf32> to vector<8x64xf32>
    %309 = vector.extract_strided_slice %288 {offsets = [0, 128], sizes = [8, 64], strides = [1, 1]} : vector<8x192xf32> to vector<8x64xf32>
    %310 = arith.addf %309, %6 : vector<8x64xf32>
    %311 = arith.mulf %297, %310 : vector<8x64xf32>
    %312 = arith.addf %308, %311 : vector<8x64xf32>
    %313 = math.tanh %312 : vector<8x64xf32>
    %314 = arith.subf %285, %313 : vector<8x64xf32>
    %315 = arith.mulf %306, %314 : vector<8x64xf32>
    %316 = arith.addf %313, %315 : vector<8x64xf32>
    %c7_i32_128 = arith.constant 7 : i32
    %317 = arith.subi %c7_i32_128, %286 : i32
    %318 = vector.broadcast %286 : i32 to vector<1x64xi32>
    %319 = vector.broadcast %317 : i32 to vector<1x64xi32>
    %320 = arith.select %10, %318, %319 : vector<1x64xi1>, vector<1x64xi32>
    %321 = vector.broadcast %7 : vector<8x1xi32> to vector<8x64xi32>
    %322 = vector.broadcast %320 : vector<1x64xi32> to vector<8x64xi32>
    %323 = arith.cmpi sgt, %321, %322 : vector<8x64xi32>
    %324 = arith.select %323, %316, %285 : vector<8x64xi1>, vector<8x64xf32>
    %c0_129 = arith.constant 0 : index
    %c0_130 = arith.constant 0 : index
    %325 = vector.load %arg11[%c0_129, %c0_130] : memref<8x64xf32, #tpu.memory_space<vmem>>, vector<8x64xf32>
    tpu.vector_store %arg11[%c0_129, %c0_130], %324 {strides = array<i32>} : memref<8x64xf32, #tpu.memory_space<vmem>>, vector<8x64xf32>,
    %c0_i32_131 = arith.constant 0 : i32
    %326 = arith.cmpi eq, %arg1, %c0_i32_131 : i32
    %327 = arith.extui %326 : i1 to i32
    %c0_i32_132 = arith.constant 0 : i32
    %328 = arith.cmpi ne, %327, %c0_i32_132 : i32
    scf.if %328 {
      %c0_133 = arith.constant 0 : index
      %c0_134 = arith.constant 0 : index
      %329 = vector.load %arg6[%c0_133, %c0_134] : memref<64x64xf32, #tpu.memory_space<vmem>>, vector<64x64xf32>
      %cst_135 = arith.constant dense<0.000000e+00> : vector<8x64xf32>
      %330 = tpu.matmul %324, %329, %cst_135 {dimension_numbers = #tpu.dot_dimension_numbers<[1], [0], [0], [1], [0, 0, 1, 1], [], []>} : vector<8x64xf32>, vector<64x64xf32>, vector<8x64xf32> -> vector<8x64xf32>
      %c0_136 = arith.constant 0 : index
      %c0_137 = arith.constant 0 : index
      %331 = vector.load %arg7[%c0_136, %c0_137] : memref<1x64xf32, #tpu.memory_space<vmem>>, vector<1x64xf32>
      %332 = vector.broadcast %331 : vector<1x64xf32> to vector<8x64xf32>
      %333 = arith.addf %330, %332 : vector<8x64xf32>
      %cst_138 = arith.constant 0.000000e+00 : f32
      %334 = vector.broadcast %cst_138 : f32 to vector<8x64xf32>
      %335 = arith.maximumf %333, %334 : vector<8x64xf32>
      %c0_139 = arith.constant 0 : index
      %c0_140 = arith.constant 0 : index
      %336 = vector.load %arg8[%c0_139, %c0_140] : memref<1x64xf32, #tpu.memory_space<vmem>>, vector<1x64xf32>
      %337 = vector.broadcast %336 : vector<1x64xf32> to vector<8x64xf32>
      %338 = arith.mulf %335, %337 : vector<8x64xf32>
      %cst_141 = arith.constant dense<0.000000e+00> : vector<8xf32>
      %339 = vector.multi_reduction <add>, %338, %cst_141 [1] : vector<8x64xf32> to vector<8xf32>
      %340 = vector.shape_cast %339 : vector<8xf32> to vector<8x1xf32>
      %c0_142 = arith.constant 0 : index
      %c0_143 = arith.constant 0 : index
      %341 = vector.load %arg9[%c0_142, %c0_143] : memref<1x1xf32, #tpu.memory_space<vmem>>, vector<1x1xf32>
      %342 = vector.broadcast %341 : vector<1x1xf32> to vector<8x1xf32>
      %343 = arith.addf %340, %342 : vector<8x1xf32>
      %cst_144 = arith.constant 0.000000e+00 : f32
      %344 = vector.broadcast %cst_144 : f32 to vector<8x1xf32>
      %345 = arith.maximumf %343, %344 : vector<8x1xf32>
      %346 = arith.negf %345 : vector<8x1xf32>
      %347 = math.exp %346 : vector<8x1xf32>
      %cst_145 = arith.constant 1.000000e+00 : f32
      %348 = vector.broadcast %cst_145 : f32 to vector<8x1xf32>
      %349 = arith.addf %348, %347 : vector<8x1xf32>
      %350 = arith.divf %348, %349 : vector<8x1xf32>
      %cst_146 = arith.constant 1.000000e+02 : f32
      %351 = vector.broadcast %cst_146 : f32 to vector<8x1xf32>
      %352 = arith.mulf %350, %351 : vector<8x1xf32>
      %c0_147 = arith.constant 0 : index
      %c0_148 = arith.constant 0 : index
      %353 = vector.load %arg10[%c0_147, %c0_148] : memref<8x1xf32, #tpu.memory_space<vmem>>, vector<8x1xf32>
      tpu.vector_store %arg10[%c0_147, %c0_148], %352 {strides = array<i32>} : memref<8x1xf32, #tpu.memory_space<vmem>>, vector<8x1xf32>,
    } else {
    }
    return
  }
  func.func @transform_0(%arg0: i32, %arg1: i32) -> (i32, i32, i32, i32) {
    %c0_i32 = arith.constant 0 : i32
    %c0_i32_0 = arith.constant 0 : i32
    %c0_i32_1 = arith.constant 0 : i32
    return %c0_i32, %arg1, %arg0, %c0_i32_0 : i32, i32, i32, i32
  }
  func.func @transform_1(%arg0: i32, %arg1: i32) -> (i32, i32) {
    %c0_i32 = arith.constant 0 : i32
    %c0_i32_0 = arith.constant 0 : i32
    return %arg0, %c0_i32 : i32, i32
  }
  func.func @transform_2(%arg0: i32, %arg1: i32) -> (i32, i32) {
    %c0_i32 = arith.constant 0 : i32
    %c0_i32_0 = arith.constant 0 : i32
    %c0_i32_1 = arith.constant 0 : i32
    return %c0_i32, %c0_i32_0 : i32, i32
  }
  func.func @transform_3(%arg0: i32, %arg1: i32) -> (i32, i32) {
    %c0_i32 = arith.constant 0 : i32
    %c0_i32_0 = arith.constant 0 : i32
    %c0_i32_1 = arith.constant 0 : i32
    return %c0_i32, %c0_i32_0 : i32, i32
  }
  func.func @transform_4(%arg0: i32, %arg1: i32) -> (i32, i32) {
    %c0_i32 = arith.constant 0 : i32
    %c0_i32_0 = arith.constant 0 : i32
    %c0_i32_1 = arith.constant 0 : i32
    return %c0_i32, %c0_i32_0 : i32, i32
  }
  func.func @transform_5(%arg0: i32, %arg1: i32) -> (i32, i32) {
    %c0_i32 = arith.constant 0 : i32
    %c0_i32_0 = arith.constant 0 : i32
    %c0_i32_1 = arith.constant 0 : i32
    return %c0_i32, %c0_i32_0 : i32, i32
  }
  func.func @transform_6(%arg0: i32, %arg1: i32) -> (i32, i32) {
    %c0_i32 = arith.constant 0 : i32
    %c0_i32_0 = arith.constant 0 : i32
    %c0_i32_1 = arith.constant 0 : i32
    return %c0_i32, %c0_i32_0 : i32, i32
  }
  func.func @transform_7(%arg0: i32, %arg1: i32) -> (i32, i32) {
    %c0_i32 = arith.constant 0 : i32
    %c0_i32_0 = arith.constant 0 : i32
    %c0_i32_1 = arith.constant 0 : i32
    return %c0_i32, %c0_i32_0 : i32, i32
  }
  func.func @transform_8(%arg0: i32, %arg1: i32) -> (i32, i32) {
    %c0_i32 = arith.constant 0 : i32
    %c0_i32_0 = arith.constant 0 : i32
    return %arg0, %c0_i32 : i32, i32
  }
}

</mosaic_0001>

<bundles_post_ra>
// kernel: reverse
= control target key start
LH: loop header
LB: loop body
LE: loop exit
PB: predicated region body
PF: predicated region fallthrough
CT: control target
= control target key end

     0   :  { %s104_s0 = inlined_call_operand.vmem [shape: f32[8,8,32], index: 0, kind: input, shape index: {}]   ;;  %s105_s1 = inlined_call_operand.vmem [shape: f32[8,8,32], index: 1, kind: output, shape index: {}]  }
   0x1   :  { %v32_v0 = vld [vmem:[%s104_s0 + $0x38] sm:$0xff]  ;;  %v33_v1 = vld [vmem:[%s104_s0 + $0x30] sm:$0xff]  ;;  %v35_v2 = vld [vmem:[%s104_s0 + $0x28] sm:$0xff] }
   0x2   :  { %4 = vst [vmem:[%s105_s1] sm:$0xff] %v32_v0  ;;  %v37_v3 = vld [vmem:[%s104_s0 + $0x20] sm:$0xff]  ;;  %v39_v4 = vld [vmem:[%s104_s0 + $0x18] sm:$0xff]  ;;  %v41_v5 = vld [vmem:[%s104_s0 + $0x10] sm:$0xff] }
   0x3   :  { %34 = vst [vmem:[%s105_s1 + $0x8] sm:$0xff] %v33_v1  ;;  %v43_v6 = vld [vmem:[%s104_s0 + $0x8] sm:$0xff]  ;;  %v29_v7 = vld [vmem:[%s104_s0] sm:$0xff] }
   0x4   :  { %36 = vst [vmem:[%s105_s1 + $0x10] sm:$0xff] %v35_v2 }
   0x5   :  { %38 = vst [vmem:[%s105_s1 + $0x18] sm:$0xff] %v37_v3 }
   0x6   :  { %40 = vst [vmem:[%s105_s1 + $0x20] sm:$0xff] %v39_v4 }
   0x7   :  { %42 = vst [vmem:[%s105_s1 + $0x28] sm:$0xff] %v41_v5 }
   0x8   :  { %44 = vst [vmem:[%s105_s1 + $0x30] sm:$0xff] %v43_v6 }
   0x9   :  { %45 = vst [vmem:[%s105_s1 + $0x38] sm:$0xff] %v29_v7 }

// kernel: rnn_survival_predictor.1
= control target key start
LH: loop header
LB: loop body
LE: loop exit
PB: predicated region body
PF: predicated region fallthrough
CT: control target
= control target key end

     0   :  { %vm36_vm0 = vcmask 523264   ;;  %v1126_v5 = vmov 0.0   ;;  %s1127_s16 = smov 64   ;;  %v1128_v30 = vmov 0   ;;  %v51_v59 = vlaneseq  ;;  %s1540_s2 = inlined_call_operand.vmem [shape: bf16[64,192], index: 2, kind: input, shape index: {}]   ;;  %s1541_s3 = inlined_call_operand.vmem [shape: f32[1,64], index: 3, kind: input, shape index: {}]   ;;  %s1542_s0 = inlined_call_operand.vmem [shape: f32[3,8,8,64], index: 0, kind: input, shape index: {}]   ;;  %s1543_s1 = inlined_call_operand.vmem [shape: s32[8,1], index: 1, kind: input, shape index: {}]   ;;  %s1544_s5 = inlined_call_operand.vmem [shape: f32[1,64], index: 5, kind: input, shape index: {}]   ;;  %s1545_s4 = inlined_call_operand.vmem [shape: f32[64,64], index: 4, kind: input, shape index: {}]   ;;  %s1546_s6 = inlined_call_operand.vmem [shape: f32[1,64], index: 6, kind: input, shape index: {}]   ;;  %s1547_s7 = inlined_call_operand.<no memory space> [shape: f32[1,1], index: 7, kind: input, shape index: {}]   ;;  %s1548_s8 = inlined_call_operand.vmem [shape: f32[8,1], index: 8, kind: output, shape index: {}]  }
   0x1   :  { %v956_v0 = vld [vmem:[%s1540_s2 + $0x30] sm:$0xf]  ;;  %v1026_v1 = vld [vmem:[%s1540_s2 + $0x34] sm:$0xf0]  ;;  %v948_v2 = vld [vmem:[%s1540_s2 + $0x20] sm:$0xf]  ;;  %1037 = vset.pattern.permute.xlu0 %v1128_v30 }
   0x2   :  { %v1190_v3 = vor.u32 %v1026_v1, %v956_v0  ;;  %v1024_v4 = vld [vmem:[%s1540_s2 + $0x24] sm:$0xf0]  ;;  %37 = vst.msk [vmem:[#allocation2] sm:$0xff] %vm36_vm0, %v1126_v5  ;;  %v1025_v7 = vld [vmem:[%s1540_s2 + $0x34] sm:$0xf]  ;;  %v127_v27 = vld [vmem:[%s1542_s0] sm:$0xff] }
   0x3   :  { %v1197_v6 = vor.u32 %v1024_v4, %v948_v2  ;;  %v958_v8 = vld [vmem:[%s1540_s2 + $0x38] sm:$0xf0]  ;;  %v1023_v9 = vld [vmem:[%s1540_s2 + $0x24] sm:$0xf]  ;;  %v940_v10 = vld [vmem:[%s1540_s2 + $0x10] sm:$0xf] }
   0x4   :  { %105 = vmatpush.bf16.msra.mxu0 %v1190_v3  ;;  %201 = vmatpush.bf16.msra.mxu2 %v1190_v3  ;;  %v1022_v11 = vld [vmem:[%s1540_s2 + $0x14] sm:$0xf0]  ;;  %v1215_v12 = vor.u32 %v1025_v7, %v958_v8  ;;  %v950_v13 = vld [vmem:[%s1540_s2 + $0x28] sm:$0xf0]  ;;  %v1021_v16 = vld [vmem:[%s1540_s2 + $0x14] sm:$0xf] }
   0x5   :  { %v1221_v14 = vor.u32 %v1023_v9, %v950_v13  ;;  %v1225_v15 = vor.u32 %v1022_v11, %v940_v10  ;;  %v942_v17 = vld [vmem:[%s1540_s2 + $0x18] sm:$0xf0]  ;;  %v932_v18 = vld [vmem:[%s1540_s2] sm:$0xf]  ;;  %v1020_v19 = vld [vmem:[%s1540_s2 + $0x4] sm:$0xf0] }
   0x6   :  { %118 = vmatpush.bf16.msra.mxu1 %v1215_v12  ;;  %214 = vmatpush.bf16.msra.mxu3 %v1215_v12  ;;  %v1241_v20 = vor.u32 %v1021_v16, %v942_v17  ;;  %v1245_v21 = vor.u32 %v1020_v19, %v932_v18  ;;  %v1019_v23 = vld [vmem:[%s1540_s2 + $0x4] sm:$0xf]  ;;  %v934_v24 = vld [vmem:[%s1540_s2 + $0x8] sm:$0xf0]  ;;  %v1303_v40 = vld [vmem:[%s1541_s3] ss:$0 sm:$0xff] }
   0x7   :  { %v1259_v26 = vor.u32 %v1019_v23, %v934_v24  ;;  %v50_v33 = vld [vmem:[%s1543_s1] sm:$0xff]  ;;  %v1312_v62 = vand.u32 127, %v51_v59  ;;  %v1129_v11 = vmov 7  }
   0x8   :  { %106 = vmatpush.bf16.msra.mxu0 %v1197_v6  ;;  %202 = vmatpush.bf16.msra.mxu2 %v1197_v6  ;;  %v965_v51 = vld [vmem:[%s1542_s0 + $0x40] sm:$0xff] }
   0x9   :  { %v1247_v22 = vld [vmem:[#allocation2] sm:$0xff]  ;;  %vm53_vm6 = vcmp.lt.s32.totalorder %v1312_v62, 32 }
   0xa   :  { %119 = vmatpush.bf16.msra.mxu1 %v1221_v14  ;;  %215 = vmatpush.bf16.msra.mxu3 %v1221_v14  ;;  %v56_v25 = vpack.c.bf16 %v1247_v22, %v1247_v22  ;;  %v967_v57 = vld [vmem:[%s1542_s0 + $0x80] sm:$0xff]  ;;  %v186_v13 = vsel %vm53_vm6, 0, %v1129_v11 }
   0xb   :  { %v1039_v62 = vld [vmem:[%s1544_s5] ss:$0 sm:$0xff] }
   0xc   :  { %107 = vmatpush.bf16.msra.mxu0 %v1225_v15  ;;  %203 = vmatpush.bf16.msra.mxu2 %v1225_v15 }
   0xe   :  { %120 = vmatpush.bf16.msra.mxu1 %v1241_v20  ;;  %216 = vmatpush.bf16.msra.mxu3 %v1241_v20 }
  0x10   :  { %108 = vmatpush.bf16.msra.mxu0 %v1245_v21  ;;  %204 = vmatpush.bf16.msra.mxu2 %v1245_v21 }
  0x12   :  { %121 = vmatpush.bf16.msra.mxu1 %v1259_v26  ;;  %217 = vmatpush.bf16.msra.mxu3 %v1259_v26 }
  0x13   :  { %962 = vmatmul.msk.bf16.vlgmr.msra.gmra.mxu0 %vm36_vm0, %v56_v25 }
  0x14   :  { %295 = vmatpush.bf16.msrb.mxu0 %v1190_v3  ;;  %389 = vmatpush.bf16.msrb.mxu2 %v1190_v3 }
  0x15   :  { %963 = vmatmul.msk.bf16.vlgmr.msra.gmra.mxu1 %vm36_vm0, %v56_v25 }
  0x16   :  { %308 = vmatpush.bf16.msrb.mxu1 %v1215_v12  ;;  %402 = vmatpush.bf16.msrb.mxu3 %v1215_v12 }
  0x18   :  { %296 = vmatpush.bf16.msrb.mxu0 %v1197_v6  ;;  %390 = vmatpush.bf16.msrb.mxu2 %v1197_v6 }
  0x1a   :  { %309 = vmatpush.bf16.msrb.mxu1 %v1221_v14  ;;  %403 = vmatpush.bf16.msrb.mxu3 %v1221_v14 }
  0x1c   :  { %297 = vmatpush.bf16.msrb.mxu0 %v1225_v15  ;;  %391 = vmatpush.bf16.msrb.mxu2 %v1225_v15 }
  0x1e   :  { %310 = vmatpush.bf16.msrb.mxu1 %v1241_v20  ;;  %404 = vmatpush.bf16.msrb.mxu3 %v1241_v20 }
  0x20   :  { %298 = vmatpush.bf16.msrb.mxu0 %v1245_v21  ;;  %392 = vmatpush.bf16.msrb.mxu2 %v1245_v21 }
  0x22   :  { %311 = vmatpush.bf16.msrb.mxu1 %v1259_v26  ;;  %405 = vmatpush.bf16.msrb.mxu3 %v1259_v26 }
  0x24   :  { %483 = vmatpush.bf16.msra.mxu0 %v1190_v3 }
  0x26   :  { %496 = vmatpush.bf16.msra.mxu1 %v1215_v12 }
  0x28   :  { %484 = vmatpush.bf16.msra.mxu0 %v1197_v6 }
  0x2a   :  { %497 = vmatpush.bf16.msra.mxu1 %v1221_v14 }
  0x2c   :  { %485 = vmatpush.bf16.msra.mxu0 %v1225_v15 }
  0x2e   :  { %498 = vmatpush.bf16.msra.mxu1 %v1241_v20 }
  0x30   :  { %486 = vmatpush.bf16.msra.mxu0 %v1245_v21 }
  0x32   :  { %499 = vmatpush.bf16.msra.mxu1 %v1259_v26 }
  0x90   :  { %v110_v28 = vpop.f32.mrf.mxu0 }
  0x91   :  { %v128_v29 = vadd.f32 %v127_v27, %v110_v28  ;;  %151 = vrot.lane.b32.xlu0 %v110_v28, %s1127_s16 }
  0x92   :  { %v123_v32 = vpop.f32.mrf.mxu1 }
  0x93   :  { %v964_v31 = vmul.f32 -1.442695, %v128_v29  ;;  %v176_v46 = vadd.f32 %v1303_v40, %v123_v32 }
  0x95   :  { %1042 = vpow2.f32 %v964_v31 }
  0x98   :  { %v112_v34 = vpop.f32.mrf.mxu0 }
  0x99   :  { %188 = vperm.xlu0 %1037, %v50_v33  }
  0x9a   :  { %v125_v36 = vpop.f32.mrf.mxu1 }
  0x9b   :  { %v1043_v35 = vpop.eup %1042 }
  0x9c   :  { %v132_v37 = vadd.f32 1.0, %v1043_v35 }
  0x9e   :  { %1044 = vrcp.f32 %v132_v37  ;;  %v144_v42 = vand.u32 2147483648, %v132_v37  ;;  %v142_v44 = vand.u32 2147483647, %v132_v37  ;;  %vm138_vm2 = vweird.f32 %v132_v37 }
  0xa0   :  { %v145_v47 = vor.u32 1.1754944e-38, %v144_v42  ;;  %vm143_vm4 = vcmp.eq.f32.partialorder %v142_v44, 8.507059e+37 }
  0xa4   :  { %v1045_v38 = vpop.eup %1044 }
  0xa5   :  { %v134_v39 = vmul.f32 %v1045_v38, %v132_v37  ;;  %vm139_vm1 = vweird.f32 %v1045_v38 }
  0xa6   :  { %vm140_vm3 = vmor %vm138_vm2, %vm139_vm1 }
  0xa7   :  { %v135_v41 = vsub.f32 1.0, %v134_v39 }
  0xa9   :  { %v136_v43 = vmul.f32 %v1045_v38, %v135_v41 }
  0xab   :  { %v137_v45 = vadd.f32 %v1045_v38, %v136_v43 }
  0xad   :  { %v141_v48 = vsel %vm140_vm3, %v1045_v38, %v137_v45 }
  0xae   :  { %v146_v49 = vsel %vm143_vm4, %v145_v47, %v141_v48  ;;  %v972_v47 = vld [vmem:[%s1542_s0 + $0x48] sm:$0xff] }
  0xaf   :  { %v177_v50 = vmul.f32 %v176_v46, %v146_v49 }
  0xb1   :  { %v178_v58 = vadd.f32 %v967_v57, %v177_v50 }
 0x103   :  { %v152_v52 = vpop.permute.xlu0 %151 }
 0x104   :  { %v154_v53 = vadd.f32 %v965_v51, %v152_v52 }
 0x106   :  { %v966_v54 = vmul.f32 -1.442695, %v154_v53  ;;  %v974_v53 = vld [vmem:[%s1542_s0 + $0x88] sm:$0xff] }
 0x108   :  { %1046 = vpow2.f32 %v966_v54 }
 0x10b   :  { %v1316_v9 = vpop.permute.xlu0 %188 }
 0x10c   :  { %vm190_vm10 = vcmp.gt.s32.totalorder %v1316_v9, %v186_v13 }
 0x10e   :  { %v1047_v55 = vpop.eup %1046 }
 0x10f   :  { %v158_v56 = vadd.f32 1.0, %v1047_v55 }
 0x111   :  { %1048 = vrcp.f32 %v158_v56  ;;  %v170_v0 = vand.u32 2147483648, %v158_v56  ;;  %v168_v2 = vand.u32 2147483647, %v158_v56  ;;  %vm164_vm7 = vweird.f32 %v158_v56 }
 0x112   :  { %1050 = vtanh.f32 %v178_v58 }
 0x113   :  { %v171_v7 = vor.u32 1.1754944e-38, %v170_v0  ;;  %vm169_vm9 = vcmp.eq.f32.partialorder %v168_v2, 8.507059e+37 }
 0x117   :  { %v1049_v60 = vpop.eup %1048 }
 0x118   :  { %v160_v61 = vmul.f32 %v1049_v60, %v158_v56  ;;  %vm165_vm5 = vweird.f32 %v1049_v60  ;;  %v1051_v4 = vpop.eup %1050 }
 0x119   :  { %vm166_vm8 = vmor %vm164_vm7, %vm165_vm5  ;;  %v180_v8 = vsub.f32 %v1247_v22, %v1051_v4 }
 0x11a   :  { %v161_v63 = vsub.f32 1.0, %v160_v61 }
 0x11c   :  { %v162_v1 = vmul.f32 %v1049_v60, %v161_v63 }
 0x11e   :  { %v163_v5 = vadd.f32 %v1049_v60, %v162_v1 }
 0x120   :  { %v167_v10 = vsel %vm166_vm8, %v1049_v60, %v163_v5 }
 0x121   :  { %v172_v16 = vsel %vm169_vm9, %v171_v7, %v167_v10  ;;  %v1130_v7 = vmov 6  }
 0x122   :  { %v181_v17 = vmul.f32 %v180_v8, %v172_v16  ;;  %v283_v8 = vsel %vm53_vm6, 1, %v1130_v7  ;;  %v977_v16 = vld [vmem:[%s1542_s0 + $0x10] sm:$0xff]  ;;  %v984_v7 = vld [vmem:[%s1542_s0 + $0x18] sm:$0xff] }
 0x123   :  { %vm284_vm4 = vcmp.gt.s32.totalorder %v1316_v9, %v283_v8 }
 0x124   :  { %v182_v18 = vadd.f32 %v1051_v4, %v181_v17 }
 0x126   :  { %v1322_v19 = vsel %vm190_vm10, %v182_v18, %v1247_v22  ;;  %v970_v22 = vld [vmem:[%s1542_s0 + $0x8] sm:$0xff] }
 0x127   :  { %v193_v23 = vpack.c.bf16 %v1322_v19, %v1322_v19 }
 0x129   :  { %968 = vmatmul.msk.bf16.vlgmr.msra.gmra.mxu2 %vm36_vm0, %v193_v23  ;;  %969 = vmatmul.msk.bf16.vlgmr.msra.gmra.mxu3 %vm36_vm0, %v193_v23 }
 0x12a   :  { %577 = vmatpush.bf16.msra.mxu2 %v1190_v3  ;;  %590 = vmatpush.bf16.msra.mxu3 %v1215_v12 }
 0x12e   :  { %578 = vmatpush.bf16.msra.mxu2 %v1197_v6  ;;  %591 = vmatpush.bf16.msra.mxu3 %v1221_v14 }
 0x132   :  { %579 = vmatpush.bf16.msra.mxu2 %v1225_v15  ;;  %592 = vmatpush.bf16.msra.mxu3 %v1241_v20 }
 0x136   :  { %580 = vmatpush.bf16.msra.mxu2 %v1245_v21  ;;  %593 = vmatpush.bf16.msra.mxu3 %v1259_v26 }
 0x1ac   :  { %v206_v24 = vpop.f32.mrf.mxu2  ;;  %v219_v25 = vpop.f32.mrf.mxu3 }
 0x1ad   :  { %v225_v27 = vadd.f32 %v970_v22, %v206_v24  ;;  %248 = vrot.lane.b32.xlu1 %v206_v24, %s1127_s16  ;;  %v273_v44 = vadd.f32 %v1303_v40, %v219_v25 }
 0x1af   :  { %v971_v28 = vmul.f32 -1.442695, %v225_v27 }
 0x1b1   :  { %1052 = vpow2.f32 %v971_v28 }
 0x1b4   :  { %v208_v29 = vpop.f32.mrf.mxu2  ;;  %v221_v31 = vpop.f32.mrf.mxu3 }
 0x1b7   :  { %v1053_v32 = vpop.eup %1052 }
 0x1b8   :  { %v229_v33 = vadd.f32 1.0, %v1053_v32 }
 0x1ba   :  { %1054 = vrcp.f32 %v229_v33  ;;  %v241_v37 = vand.u32 2147483648, %v229_v33  ;;  %v239_v39 = vand.u32 2147483647, %v229_v33  ;;  %vm235_vm12 = vweird.f32 %v229_v33 }
 0x1bc   :  { %v242_v42 = vor.u32 1.1754944e-38, %v241_v37  ;;  %vm240_vm14 = vcmp.eq.f32.partialorder %v239_v39, 8.507059e+37 }
 0x1c0   :  { %v1055_v34 = vpop.eup %1054 }
 0x1c1   :  { %v231_v35 = vmul.f32 %v1055_v34, %v229_v33  ;;  %vm236_vm11 = vweird.f32 %v1055_v34 }
 0x1c2   :  { %vm237_vm13 = vmor %vm235_vm12, %vm236_vm11 }
 0x1c3   :  { %v232_v36 = vsub.f32 1.0, %v231_v35 }
 0x1c5   :  { %v233_v38 = vmul.f32 %v1055_v34, %v232_v36 }
 0x1c7   :  { %v234_v41 = vadd.f32 %v1055_v34, %v233_v38 }
 0x1c9   :  { %v238_v43 = vsel %vm237_vm13, %v1055_v34, %v234_v41 }
 0x1ca   :  { %v243_v45 = vsel %vm240_vm14, %v242_v42, %v238_v43  ;;  %v979_v42 = vld [vmem:[%s1542_s0 + $0x50] sm:$0xff] }
 0x1cb   :  { %v274_v46 = vmul.f32 %v273_v44, %v243_v45 }
 0x1cd   :  { %v275_v54 = vadd.f32 %v974_v53, %v274_v46 }
 0x21f   :  { %v249_v48 = vpop.permute.xlu1 %248 }
 0x220   :  { %v251_v49 = vadd.f32 %v972_v47, %v249_v48  ;;  %v981_v48 = vld [vmem:[%s1542_s0 + $0x90] sm:$0xff] }
 0x222   :  { %v973_v50 = vmul.f32 -1.442695, %v251_v49 }
 0x224   :  { %1056 = vpow2.f32 %v973_v50 }
 0x22a   :  { %v1057_v51 = vpop.eup %1056 }
 0x22b   :  { %v255_v52 = vadd.f32 1.0, %v1057_v51 }
 0x22d   :  { %1058 = vrcp.f32 %v255_v52  ;;  %v267_v58 = vand.u32 2147483648, %v255_v52  ;;  %v265_v60 = vand.u32 2147483647, %v255_v52  ;;  %vm261_vm1 = vweird.f32 %v255_v52 }
 0x22e   :  { %1060 = vtanh.f32 %v275_v54 }
 0x22f   :  { %v268_v0 = vor.u32 1.1754944e-38, %v267_v58  ;;  %vm266_vm3 = vcmp.eq.f32.partialorder %v265_v60, 8.507059e+37 }
 0x233   :  { %v1059_v55 = vpop.eup %1058 }
 0x234   :  { %v257_v56 = vmul.f32 %v1059_v55, %v255_v52  ;;  %vm262_vm15 = vweird.f32 %v1059_v55  ;;  %v1061_v61 = vpop.eup %1060 }
 0x235   :  { %vm263_vm2 = vmor %vm261_vm1, %vm262_vm15  ;;  %v277_v1 = vsub.f32 %v1322_v19, %v1061_v61 }
 0x236   :  { %v258_v57 = vsub.f32 1.0, %v257_v56 }
 0x238   :  { %v259_v59 = vmul.f32 %v1059_v55, %v258_v57 }
 0x23a   :  { %v260_v63 = vadd.f32 %v1059_v55, %v259_v59 }
 0x23c   :  { %v264_v2 = vsel %vm263_vm2, %v1059_v55, %v260_v63 }
 0x23d   :  { %v269_v4 = vsel %vm266_vm3, %v268_v0, %v264_v2  ;;  %v1131_v0 = vmov 5  }
 0x23e   :  { %v278_v5 = vmul.f32 %v277_v1, %v269_v4  ;;  %v377_v1 = vsel %vm53_vm6, 2, %v1131_v0 }
 0x23f   :  { %vm378_vm14 = vcmp.gt.s32.totalorder %v1316_v9, %v377_v1 }
 0x240   :  { %v279_v10 = vadd.f32 %v1061_v61, %v278_v5 }
 0x242   :  { %v1352_v11 = vsel %vm284_vm4, %v279_v10, %v1322_v19 }
 0x243   :  { %v287_v13 = vpack.c.bf16 %v1352_v11, %v1352_v11 }
 0x245   :  { %975 = vmatmul.msk.bf16.vlgmr.msrb.gmra.mxu0 %vm36_vm0, %v287_v13  ;;  %976 = vmatmul.msk.bf16.vlgmr.msrb.gmra.mxu1 %vm36_vm0, %v287_v13 }
 0x246   :  { %671 = vmatpush.bf16.msrb.mxu0 %v1190_v3  ;;  %684 = vmatpush.bf16.msrb.mxu1 %v1215_v12 }
 0x24a   :  { %672 = vmatpush.bf16.msrb.mxu0 %v1197_v6  ;;  %685 = vmatpush.bf16.msrb.mxu1 %v1221_v14 }
 0x24e   :  { %673 = vmatpush.bf16.msrb.mxu0 %v1225_v15  ;;  %686 = vmatpush.bf16.msrb.mxu1 %v1241_v20 }
 0x252   :  { %674 = vmatpush.bf16.msrb.mxu0 %v1245_v21  ;;  %687 = vmatpush.bf16.msrb.mxu1 %v1259_v26 }
 0x2c2   :  { %v300_v17 = vpop.f32.mrf.mxu0  ;;  %v313_v18 = vpop.f32.mrf.mxu1 }
 0x2c3   :  { %v319_v19 = vadd.f32 %v977_v16, %v300_v17  ;;  %342 = vrot.lane.b32.xlu1 %v300_v17, %s1127_s16  ;;  %v367_v38 = vadd.f32 %v1303_v40, %v313_v18 }
 0x2c5   :  { %v978_v23 = vmul.f32 -1.442695, %v319_v19 }
 0x2c7   :  { %1062 = vpow2.f32 %v978_v23 }
 0x2ca   :  { %v302_v22 = vpop.f32.mrf.mxu0  ;;  %v315_v24 = vpop.f32.mrf.mxu1 }
 0x2cd   :  { %v1063_v25 = vpop.eup %1062 }
 0x2ce   :  { %v323_v27 = vadd.f32 1.0, %v1063_v25 }
 0x2d0   :  { %1064 = vrcp.f32 %v323_v27  ;;  %v335_v32 = vand.u32 2147483648, %v323_v27  ;;  %v333_v34 = vand.u32 2147483647, %v323_v27  ;;  %vm329_vm7 = vweird.f32 %v323_v27 }
 0x2d2   :  { %v336_v36 = vor.u32 1.1754944e-38, %v335_v32  ;;  %vm334_vm9 = vcmp.eq.f32.partialorder %v333_v34, 8.507059e+37  ;;  %v988_v34 = vld [vmem:[%s1542_s0 + $0x98] sm:$0xff] }
 0x2d6   :  { %v1065_v28 = vpop.eup %1064 }
 0x2d7   :  { %v325_v29 = vmul.f32 %v1065_v28, %v323_v27  ;;  %vm330_vm5 = vweird.f32 %v1065_v28  ;;  %v986_v27 = vld [vmem:[%s1542_s0 + $0x58] sm:$0xff] }
 0x2d8   :  { %vm331_vm8 = vmor %vm329_vm7, %vm330_vm5 }
 0x2d9   :  { %v326_v31 = vsub.f32 1.0, %v325_v29 }
 0x2db   :  { %v327_v33 = vmul.f32 %v1065_v28, %v326_v31 }
 0x2dd   :  { %v328_v35 = vadd.f32 %v1065_v28, %v327_v33 }
 0x2df   :  { %v332_v37 = vsel %vm331_vm8, %v1065_v28, %v328_v35 }
 0x2e0   :  { %v337_v39 = vsel %vm334_vm9, %v336_v36, %v332_v37 }
 0x2e1   :  { %v368_v41 = vmul.f32 %v367_v38, %v337_v39 }
 0x2e3   :  { %v369_v49 = vadd.f32 %v981_v48, %v368_v41 }
 0x335   :  { %v343_v43 = vpop.permute.xlu1 %342 }
 0x336   :  { %v345_v44 = vadd.f32 %v979_v42, %v343_v43 }
 0x338   :  { %v980_v45 = vmul.f32 -1.442695, %v345_v44 }
 0x33a   :  { %1066 = vpow2.f32 %v980_v45 }
 0x340   :  { %v1067_v46 = vpop.eup %1066 }
 0x341   :  { %v349_v47 = vadd.f32 1.0, %v1067_v46 }
 0x343   :  { %1068 = vrcp.f32 %v349_v47  ;;  %v361_v53 = vand.u32 2147483648, %v349_v47  ;;  %v359_v55 = vand.u32 2147483647, %v349_v47  ;;  %vm355_vm11 = vweird.f32 %v349_v47 }
 0x344   :  { %1070 = vtanh.f32 %v369_v49 }
 0x345   :  { %v362_v58 = vor.u32 1.1754944e-38, %v361_v53  ;;  %vm360_vm13 = vcmp.eq.f32.partialorder %v359_v55, 8.507059e+37  ;;  %v991_v55 = vld [vmem:[%s1542_s0 + $0x20] sm:$0xff] }
 0x349   :  { %v1069_v50 = vpop.eup %1068 }
 0x34a   :  { %v351_v51 = vmul.f32 %v1069_v50, %v349_v47  ;;  %vm356_vm10 = vweird.f32 %v1069_v50  ;;  %v1071_v56 = vpop.eup %1070 }
 0x34b   :  { %vm357_vm12 = vmor %vm355_vm11, %vm356_vm10  ;;  %v371_v59 = vsub.f32 %v1352_v11, %v1071_v56 }
 0x34c   :  { %v352_v52 = vsub.f32 1.0, %v351_v51 }
 0x34e   :  { %v353_v54 = vmul.f32 %v1069_v50, %v352_v52 }
 0x350   :  { %v354_v57 = vadd.f32 %v1069_v50, %v353_v54 }
 0x352   :  { %v358_v60 = vsel %vm357_vm12, %v1069_v50, %v354_v57  ;;  %v1132_v50 = vmov 4  }
 0x353   :  { %v363_v61 = vsel %vm360_vm13, %v362_v58, %v358_v60  ;;  %v471_v51 = vsel %vm53_vm6, 3, %v1132_v50 }
 0x354   :  { %v372_v63 = vmul.f32 %v371_v59, %v363_v61  ;;  %vm472_vm9 = vcmp.gt.s32.totalorder %v1316_v9, %v471_v51 }
 0x356   :  { %v373_v2 = vadd.f32 %v1071_v56, %v372_v63 }
 0x358   :  { %v1382_v4 = vsel %vm378_vm14, %v373_v2, %v1352_v11 }
 0x359   :  { %v381_v5 = vpack.c.bf16 %v1382_v4, %v1382_v4 }
 0x35b   :  { %982 = vmatmul.msk.bf16.vlgmr.msrb.gmra.mxu2 %vm36_vm0, %v381_v5  ;;  %983 = vmatmul.msk.bf16.vlgmr.msrb.gmra.mxu3 %vm36_vm0, %v381_v5 }
 0x35c   :  { %765 = vmatpush.bf16.msrb.mxu2 %v1190_v3  ;;  %778 = vmatpush.bf16.msrb.mxu3 %v1215_v12 }
 0x360   :  { %766 = vmatpush.bf16.msrb.mxu2 %v1197_v6  ;;  %779 = vmatpush.bf16.msrb.mxu3 %v1221_v14 }
 0x364   :  { %767 = vmatpush.bf16.msrb.mxu2 %v1225_v15  ;;  %780 = vmatpush.bf16.msrb.mxu3 %v1241_v20 }
 0x368   :  { %768 = vmatpush.bf16.msrb.mxu2 %v1245_v21  ;;  %781 = vmatpush.bf16.msrb.mxu3 %v1259_v26 }
 0x3de   :  { %v394_v8 = vpop.f32.mrf.mxu2  ;;  %v407_v3 = vpop.f32.mrf.mxu3 }
 0x3df   :  { %v413_v10 = vadd.f32 %v984_v7, %v394_v8  ;;  %436 = vrot.lane.b32.xlu2 %v394_v8, %s1127_s16  ;;  %v461_v22 = vadd.f32 %v1303_v40, %v407_v3 }
 0x3e1   :  { %v985_v6 = vmul.f32 -1.442695, %v413_v10 }
 0x3e3   :  { %1072 = vpow2.f32 %v985_v6 }
 0x3e6   :  { %v396_v12 = vpop.f32.mrf.mxu2  ;;  %v409_v14 = vpop.f32.mrf.mxu3 }
 0x3e9   :  { %v1073_v15 = vpop.eup %1072 }
 0x3ea   :  { %v417_v11 = vadd.f32 1.0, %v1073_v15 }
 0x3ec   :  { %1074 = vrcp.f32 %v417_v11  ;;  %v429_v26 = vand.u32 2147483648, %v417_v11  ;;  %v427_v17 = vand.u32 2147483647, %v417_v11  ;;  %vm423_vm1 = vweird.f32 %v417_v11 }
 0x3ee   :  { %v430_v19 = vor.u32 1.1754944e-38, %v429_v26  ;;  %vm428_vm3 = vcmp.eq.f32.partialorder %v427_v17, 8.507059e+37  ;;  %v995_v17 = vld [vmem:[%s1542_s0 + $0xa0] sm:$0xff] }
 0x3f2   :  { %v1075_v20 = vpop.eup %1074 }
 0x3f3   :  { %v419_v21 = vmul.f32 %v1075_v20, %v417_v11  ;;  %vm424_vm15 = vweird.f32 %v1075_v20  ;;  %v993_v11 = vld [vmem:[%s1542_s0 + $0x60] sm:$0xff] }
 0x3f4   :  { %vm425_vm2 = vmor %vm423_vm1, %vm424_vm15 }
 0x3f5   :  { %v420_v13 = vsub.f32 1.0, %v419_v21 }
 0x3f7   :  { %v421_v16 = vmul.f32 %v1075_v20, %v420_v13 }
 0x3f9   :  { %v422_v18 = vadd.f32 %v1075_v20, %v421_v16 }
 0x3fb   :  { %v426_v23 = vsel %vm425_vm2, %v1075_v20, %v422_v18 }
 0x3fc   :  { %v431_v24 = vsel %vm428_vm3, %v430_v19, %v426_v23 }
 0x3fd   :  { %v462_v25 = vmul.f32 %v461_v22, %v431_v24 }
 0x3ff   :  { %v463_v35 = vadd.f32 %v988_v34, %v462_v25 }
 0x439   :  { %v437_v28 = vpop.permute.xlu2 %436 }
 0x43a   :  { %v439_v29 = vadd.f32 %v986_v27, %v437_v28 }
 0x43c   :  { %v987_v31 = vmul.f32 -1.442695, %v439_v29 }
 0x43e   :  { %1076 = vpow2.f32 %v987_v31 }
 0x444   :  { %v1077_v32 = vpop.eup %1076 }
 0x445   :  { %v443_v33 = vadd.f32 1.0, %v1077_v32 }
 0x447   :  { %1078 = vrcp.f32 %v443_v33  ;;  %v455_v39 = vand.u32 2147483648, %v443_v33  ;;  %v453_v42 = vand.u32 2147483647, %v443_v33  ;;  %vm449_vm5 = vweird.f32 %v443_v33 }
 0x448   :  { %1080 = vtanh.f32 %v463_v35 }
 0x449   :  { %v456_v45 = vor.u32 1.1754944e-38, %v455_v39  ;;  %vm454_vm8 = vcmp.eq.f32.partialorder %v453_v42, 8.507059e+37  ;;  %v998_v42 = vld [vmem:[%s1542_s0 + $0x28] sm:$0xff] }
 0x44d   :  { %v1079_v36 = vpop.eup %1078 }
 0x44e   :  { %v445_v37 = vmul.f32 %v1079_v36, %v443_v33  ;;  %vm450_vm4 = vweird.f32 %v1079_v36  ;;  %v1081_v43 = vpop.eup %1080 }
 0x44f   :  { %vm451_vm7 = vmor %vm449_vm5, %vm450_vm4  ;;  %v465_v46 = vsub.f32 %v1382_v4, %v1081_v43 }
 0x450   :  { %v446_v38 = vsub.f32 1.0, %v445_v37 }
 0x452   :  { %v447_v41 = vmul.f32 %v1079_v36, %v446_v38 }
 0x454   :  { %v448_v44 = vadd.f32 %v1079_v36, %v447_v41 }
 0x456   :  { %v452_v47 = vsel %vm451_vm7, %v1079_v36, %v448_v44  ;;  %v1133_v36 = vmov 3  }
 0x457   :  { %v457_v48 = vsel %vm454_vm8, %v456_v45, %v452_v47  ;;  %v565_v37 = vsel %vm53_vm6, 4, %v1133_v36 }
 0x458   :  { %v466_v49 = vmul.f32 %v465_v46, %v457_v48  ;;  %vm566_vm3 = vcmp.gt.s32.totalorder %v1316_v9, %v565_v37 }
 0x45a   :  { %v467_v52 = vadd.f32 %v1081_v43, %v466_v49 }
 0x45c   :  { %v1412_v53 = vsel %vm472_vm9, %v467_v52, %v1382_v4 }
 0x45d   :  { %v475_v54 = vpack.c.bf16 %v1412_v53, %v1412_v53 }
 0x45f   :  { %989 = vmatmul.msk.bf16.vlgmr.msra.gmra.mxu0 %vm36_vm0, %v475_v54  ;;  %990 = vmatmul.msk.bf16.vlgmr.msra.gmra.mxu1 %vm36_vm0, %v475_v54 }
 0x4dc   :  { %v488_v56 = vpop.f32.mrf.mxu0  ;;  %v501_v57 = vpop.f32.mrf.mxu1 }
 0x4dd   :  { %v507_v58 = vadd.f32 %v991_v55, %v488_v56  ;;  %530 = vrot.lane.b32.xlu2 %v488_v56, %s1127_s16  ;;  %v555_v12 = vadd.f32 %v1303_v40, %v501_v57 }
 0x4df   :  { %v992_v59 = vmul.f32 -1.442695, %v507_v58 }
 0x4e1   :  { %1082 = vpow2.f32 %v992_v59 }
 0x4e4   :  { %v490_v60 = vpop.f32.mrf.mxu0  ;;  %v503_v61 = vpop.f32.mrf.mxu1 }
 0x4e7   :  { %v1083_v63 = vpop.eup %1082 }
 0x4e8   :  { %v511_v0 = vadd.f32 1.0, %v1083_v63 }
 0x4ea   :  { %1084 = vrcp.f32 %v511_v0  ;;  %v523_v5 = vand.u32 2147483648, %v511_v0  ;;  %v521_v8 = vand.u32 2147483647, %v511_v0  ;;  %vm517_vm11 = vweird.f32 %v511_v0 }
 0x4ec   :  { %v524_v10 = vor.u32 1.1754944e-38, %v523_v5  ;;  %vm522_vm13 = vcmp.eq.f32.partialorder %v521_v8, 8.507059e+37  ;;  %v1002_v8 = vld [vmem:[%s1542_s0 + $0xa8] sm:$0xff] }
 0x4f0   :  { %v1085_v1 = vpop.eup %1084 }
 0x4f1   :  { %v513_v2 = vmul.f32 %v1085_v1, %v511_v0  ;;  %vm518_vm10 = vweird.f32 %v1085_v1  ;;  %v1000_v0 = vld [vmem:[%s1542_s0 + $0x68] sm:$0xff] }
 0x4f2   :  { %vm519_vm12 = vmor %vm517_vm11, %vm518_vm10 }
 0x4f3   :  { %v514_v4 = vsub.f32 1.0, %v513_v2 }
 0x4f5   :  { %v515_v7 = vmul.f32 %v1085_v1, %v514_v4 }
 0x4f7   :  { %v516_v3 = vadd.f32 %v1085_v1, %v515_v7 }
 0x4f9   :  { %v520_v6 = vsel %vm519_vm12, %v1085_v1, %v516_v3 }
 0x4fa   :  { %v525_v14 = vsel %vm522_vm13, %v524_v10, %v520_v6 }
 0x4fb   :  { %v556_v15 = vmul.f32 %v555_v12, %v525_v14 }
 0x4fd   :  { %v557_v18 = vadd.f32 %v995_v17, %v556_v15 }
 0x537   :  { %v531_v20 = vpop.permute.xlu2 %530 }
 0x538   :  { %v533_v21 = vadd.f32 %v993_v11, %v531_v20 }
 0x53a   :  { %v994_v13 = vmul.f32 -1.442695, %v533_v21 }
 0x53c   :  { %1086 = vpow2.f32 %v994_v13 }
 0x542   :  { %v1087_v26 = vpop.eup %1086 }
 0x543   :  { %v537_v16 = vadd.f32 1.0, %v1087_v26 }
 0x545   :  { %1088 = vrcp.f32 %v537_v16  ;;  %v549_v24 = vand.u32 2147483648, %v537_v16  ;;  %v547_v27 = vand.u32 2147483647, %v537_v16  ;;  %vm543_vm15 = vweird.f32 %v537_v16 }
 0x546   :  { %1090 = vtanh.f32 %v557_v18 }
 0x547   :  { %v550_v31 = vor.u32 1.1754944e-38, %v549_v24  ;;  %vm548_vm2 = vcmp.eq.f32.partialorder %v547_v27, 8.507059e+37  ;;  %v1005_v27 = vld [vmem:[%s1542_s0 + $0x30] sm:$0xff] }
 0x54b   :  { %v1089_v19 = vpop.eup %1088 }
 0x54c   :  { %v539_v23 = vmul.f32 %v1089_v19, %v537_v16  ;;  %vm544_vm14 = vweird.f32 %v1089_v19  ;;  %v1091_v28 = vpop.eup %1090 }
 0x54d   :  { %vm545_vm1 = vmor %vm543_vm15, %vm544_vm14  ;;  %v559_v32 = vsub.f32 %v1412_v53, %v1091_v28 }
 0x54e   :  { %v540_v22 = vsub.f32 1.0, %v539_v23 }
 0x550   :  { %v541_v25 = vmul.f32 %v1089_v19, %v540_v22 }
 0x552   :  { %v542_v29 = vadd.f32 %v1089_v19, %v541_v25 }
 0x554   :  { %v546_v33 = vsel %vm545_vm1, %v1089_v19, %v542_v29  ;;  %v1134_v19 = vmov 2  }
 0x555   :  { %v551_v34 = vsel %vm548_vm2, %v550_v31, %v546_v33  ;;  %v659_v23 = vsel %vm53_vm6, 5, %v1134_v19 }
 0x556   :  { %v560_v35 = vmul.f32 %v559_v32, %v551_v34  ;;  %vm660_vm13 = vcmp.gt.s32.totalorder %v1316_v9, %v659_v23 }
 0x558   :  { %v561_v38 = vadd.f32 %v1091_v28, %v560_v35 }
 0x55a   :  { %v1434_v39 = vsel %vm566_vm3, %v561_v38, %v1412_v53 }
 0x55b   :  { %v569_v41 = vpack.c.bf16 %v1434_v39, %v1434_v39 }
 0x55d   :  { %996 = vmatmul.msk.bf16.vlgmr.msra.gmra.mxu2 %vm36_vm0, %v569_v41  ;;  %997 = vmatmul.msk.bf16.vlgmr.msra.gmra.mxu3 %vm36_vm0, %v569_v41 }
 0x5e0   :  { %v582_v43 = vpop.f32.mrf.mxu2  ;;  %v595_v44 = vpop.f32.mrf.mxu3 }
 0x5e1   :  { %v601_v45 = vadd.f32 %v998_v42, %v582_v43  ;;  %624 = vrot.lane.b32.xlu1 %v582_v43, %s1127_s16  ;;  %v649_v60 = vadd.f32 %v1303_v40, %v595_v44 }
 0x5e3   :  { %v999_v46 = vmul.f32 -1.442695, %v601_v45 }
 0x5e5   :  { %1092 = vpow2.f32 %v999_v46 }
 0x5e8   :  { %v584_v47 = vpop.f32.mrf.mxu2  ;;  %v597_v48 = vpop.f32.mrf.mxu3 }
 0x5eb   :  { %v1093_v49 = vpop.eup %1092 }
 0x5ec   :  { %v605_v50 = vadd.f32 1.0, %v1093_v49 }
 0x5ee   :  { %1094 = vrcp.f32 %v605_v50  ;;  %v617_v54 = vand.u32 2147483648, %v605_v50  ;;  %v615_v56 = vand.u32 2147483647, %v605_v50  ;;  %vm611_vm5 = vweird.f32 %v605_v50 }
 0x5f0   :  { %v618_v58 = vor.u32 1.1754944e-38, %v617_v54  ;;  %vm616_vm8 = vcmp.eq.f32.partialorder %v615_v56, 8.507059e+37  ;;  %v1009_v56 = vld [vmem:[%s1542_s0 + $0xb0] sm:$0xff] }
 0x5f4   :  { %v1095_v51 = vpop.eup %1094 }
 0x5f5   :  { %v607_v52 = vmul.f32 %v1095_v51, %v605_v50  ;;  %vm612_vm4 = vweird.f32 %v1095_v51  ;;  %v1007_v50 = vld [vmem:[%s1542_s0 + $0x70] sm:$0xff] }
 0x5f6   :  { %vm613_vm7 = vmor %vm611_vm5, %vm612_vm4 }
 0x5f7   :  { %v608_v53 = vsub.f32 1.0, %v607_v52 }
 0x5f9   :  { %v609_v55 = vmul.f32 %v1095_v51, %v608_v53 }
 0x5fb   :  { %v610_v57 = vadd.f32 %v1095_v51, %v609_v55 }
 0x5fd   :  { %v614_v59 = vsel %vm613_vm7, %v1095_v51, %v610_v57 }
 0x5fe   :  { %v619_v61 = vsel %vm616_vm8, %v618_v58, %v614_v59 }
 0x5ff   :  { %v650_v63 = vmul.f32 %v649_v60, %v619_v61 }
 0x601   :  { %v651_v3 = vadd.f32 %v1002_v8, %v650_v63 }
 0x653   :  { %v625_v1 = vpop.permute.xlu1 %624 }
 0x654   :  { %v627_v2 = vadd.f32 %v1000_v0, %v625_v1 }
 0x656   :  { %v1001_v4 = vmul.f32 -1.442695, %v627_v2 }
 0x658   :  { %1096 = vpow2.f32 %v1001_v4 }
 0x65e   :  { %v1097_v5 = vpop.eup %1096 }
 0x65f   :  { %v631_v7 = vadd.f32 1.0, %v1097_v5 }
 0x661   :  { %1098 = vrcp.f32 %v631_v7  ;;  %v643_v14 = vand.u32 2147483648, %v631_v7  ;;  %v641_v11 = vand.u32 2147483647, %v631_v7  ;;  %vm637_vm10 = vweird.f32 %v631_v7 }
 0x662   :  { %1100 = vtanh.f32 %v651_v3 }
 0x663   :  { %v644_v13 = vor.u32 1.1754944e-38, %v643_v14  ;;  %vm642_vm12 = vcmp.eq.f32.partialorder %v641_v11, 8.507059e+37  ;;  %v1012_v11 = vld [vmem:[%s1542_s0 + $0x38] sm:$0xff] }
 0x667   :  { %v1099_v10 = vpop.eup %1098 }
 0x668   :  { %v633_v6 = vmul.f32 %v1099_v10, %v631_v7  ;;  %vm638_vm9 = vweird.f32 %v1099_v10  ;;  %v1101_v20 = vpop.eup %1100 }
 0x669   :  { %vm639_vm11 = vmor %vm637_vm10, %vm638_vm9  ;;  %v653_v26 = vsub.f32 %v1434_v39, %v1101_v20 }
 0x66a   :  { %v634_v12 = vsub.f32 1.0, %v633_v6 }
 0x66c   :  { %v635_v15 = vmul.f32 %v1099_v10, %v634_v12 }
 0x66e   :  { %v636_v21 = vadd.f32 %v1099_v10, %v635_v15 }
 0x670   :  { %v640_v16 = vsel %vm639_vm11, %v1099_v10, %v636_v21  ;;  %v1135_v10 = vmov 1  }
 0x671   :  { %v645_v17 = vsel %vm642_vm12, %v644_v13, %v640_v16  ;;  %v753_v6 = vsel %vm53_vm6, 6, %v1135_v10 }
 0x672   :  { %v654_v18 = vmul.f32 %v653_v26, %v645_v17  ;;  %vm754_vm8 = vcmp.gt.s32.totalorder %v1316_v9, %v753_v6 }
 0x674   :  { %v655_v22 = vadd.f32 %v1101_v20, %v654_v18 }
 0x676   :  { %v1456_v24 = vsel %vm660_vm13, %v655_v22, %v1434_v39 }
 0x677   :  { %v663_v25 = vpack.c.bf16 %v1456_v24, %v1456_v24 }
 0x679   :  { %1003 = vmatmul.msk.bf16.vlgmr.msrb.gmra.mxu0 %vm36_vm0, %v663_v25  ;;  %1004 = vmatmul.msk.bf16.vlgmr.msrb.gmra.mxu1 %vm36_vm0, %v663_v25 }
 0x6f6   :  { %v676_v28 = vpop.f32.mrf.mxu0  ;;  %v689_v29 = vpop.f32.mrf.mxu1 }
 0x6f7   :  { %v695_v31 = vadd.f32 %v1005_v27, %v676_v28  ;;  %718 = vrot.lane.b32.xlu2 %v676_v28, %s1127_s16  ;;  %v743_v47 = vadd.f32 %v1303_v40, %v689_v29 }
 0x6f9   :  { %v1006_v32 = vmul.f32 -1.442695, %v695_v31 }
 0x6fb   :  { %1102 = vpow2.f32 %v1006_v32 }
 0x6fe   :  { %v678_v33 = vpop.f32.mrf.mxu0  ;;  %v691_v34 = vpop.f32.mrf.mxu1 }
 0x701   :  { %v1103_v35 = vpop.eup %1102 }
 0x702   :  { %v699_v36 = vadd.f32 1.0, %v1103_v35 }
 0x704   :  { %1104 = vrcp.f32 %v699_v36  ;;  %v711_v41 = vand.u32 2147483648, %v699_v36  ;;  %v709_v43 = vand.u32 2147483647, %v699_v36  ;;  %vm705_vm15 = vweird.f32 %v699_v36 }
 0x706   :  { %v712_v45 = vor.u32 1.1754944e-38, %v711_v41  ;;  %vm710_vm2 = vcmp.eq.f32.partialorder %v709_v43, 8.507059e+37  ;;  %v856_v41 = vld [vmem:[%s1545_s4 + $0x10] sm:$0xff]  ;;  %v855_v43 = vld [vmem:[%s1545_s4 + $0x8] sm:$0xff] }
 0x70a   :  { %v1105_v37 = vpop.eup %1104 }
 0x70b   :  { %v701_v38 = vmul.f32 %v1105_v37, %v699_v36  ;;  %vm706_vm14 = vweird.f32 %v1105_v37  ;;  %v861_v36 = vld [vmem:[%s1545_s4 + $0x38] sm:$0xff] }
 0x70c   :  { %vm707_vm1 = vmor %vm705_vm15, %vm706_vm14  ;;  %877 = vmatpush.msra.mxu0 %v861_v36 }
 0x70d   :  { %v702_v39 = vsub.f32 1.0, %v701_v38  ;;  %v859_v38 = vld [vmem:[%s1545_s4 + $0x28] sm:$0xff] }
 0x70f   :  { %v703_v42 = vmul.f32 %v1105_v37, %v702_v39  ;;  %v857_v39 = vld [vmem:[%s1545_s4 + $0x18] sm:$0xff] }
 0x711   :  { %v704_v44 = vadd.f32 %v1105_v37, %v703_v42  ;;  %v1014_v42 = vld [vmem:[%s1542_s0 + $0x78] sm:$0xff] }
 0x713   :  { %v708_v46 = vsel %vm707_vm1, %v1105_v37, %v704_v44  ;;  %v860_v37 = vld [vmem:[%s1545_s4 + $0x30] sm:$0xff] }
 0x714   :  { %v713_v48 = vsel %vm710_vm2, %v712_v45, %v708_v46  ;;  %878 = vmatpush.msra.mxu0 %v860_v37  ;;  %v854_v45 = vld [vmem:[%s1545_s4] sm:$0xff] }
 0x715   :  { %v744_v49 = vmul.f32 %v743_v47, %v713_v48 }
 0x716   :  { %879 = vmatpush.msra.mxu0 %v859_v38 }
 0x717   :  { %v745_v57 = vadd.f32 %v1009_v56, %v744_v49 }
 0x751   :  { %v719_v51 = vpop.permute.xlu2 %718 }
 0x752   :  { %v721_v52 = vadd.f32 %v1007_v50, %v719_v51  ;;  %v1016_v50 = vld [vmem:[%s1542_s0 + $0xb8] sm:$0xff] }
 0x754   :  { %v1008_v53 = vmul.f32 -1.442695, %v721_v52 }
 0x756   :  { %1106 = vpow2.f32 %v1008_v53 }
 0x75c   :  { %v1107_v54 = vpop.eup %1106 }
 0x75d   :  { %v725_v55 = vadd.f32 1.0, %v1107_v54 }
 0x75f   :  { %1108 = vrcp.f32 %v725_v55  ;;  %v737_v61 = vand.u32 2147483648, %v725_v55  ;;  %v735_v0 = vand.u32 2147483647, %v725_v55  ;;  %vm731_vm4 = vweird.f32 %v725_v55 }
 0x760   :  { %1110 = vtanh.f32 %v745_v57 }
 0x761   :  { %v738_v4 = vor.u32 1.1754944e-38, %v737_v61  ;;  %vm736_vm7 = vcmp.eq.f32.partialorder %v735_v0, 8.507059e+37 }
 0x765   :  { %v1109_v58 = vpop.eup %1108 }
 0x766   :  { %v727_v59 = vmul.f32 %v1109_v58, %v725_v55  ;;  %vm732_vm3 = vweird.f32 %v1109_v58  ;;  %v1111_v1 = vpop.eup %1110 }
 0x767   :  { %vm733_vm5 = vmor %vm731_vm4, %vm732_vm3  ;;  %v747_v5 = vsub.f32 %v1456_v24, %v1111_v1 }
 0x768   :  { %v728_v60 = vsub.f32 1.0, %v727_v59 }
 0x76a   :  { %v729_v63 = vmul.f32 %v1109_v58, %v728_v60 }
 0x76c   :  { %v730_v2 = vadd.f32 %v1109_v58, %v729_v63 }
 0x76e   :  { %v734_v7 = vsel %vm733_vm5, %v1109_v58, %v730_v2  ;;  %vm924_vm5 = vcmask 7168  }
 0x76f   :  { %v739_v8 = vsel %vm736_vm7, %v738_v4, %v734_v7  ;;  %v13_v7 = vstv %s1547_s7 }
 0x770   :  { %v748_v3 = vmul.f32 %v747_v5, %v739_v8  ;;  %14 = vst [vmem:[#allocation3] sm:$0x1] %v13_v7 }
 0x772   :  { %v749_v12 = vadd.f32 %v1111_v1, %v748_v3  ;;  %v847_v1 = vsel %vm53_vm6, 7, %v1128_v30 }
 0x773   :  { %vm848_vm2 = vcmp.gt.s32.totalorder %v1316_v9, %v847_v1  ;;  %v1040_v9 = vld [vmem:[%s1546_s6] ss:$0 sm:$0xff] }
 0x774   :  { %v1478_v14 = vsel %vm754_vm8, %v749_v12, %v1456_v24 }
 0x775   :  { %v757_v15 = vpack.c.bf16 %v1478_v14, %v1478_v14 }
 0x777   :  { %1010 = vmatmul.msk.bf16.vlgmr.msrb.gmra.mxu2 %vm36_vm0, %v757_v15  ;;  %1011 = vmatmul.msk.bf16.vlgmr.msrb.gmra.mxu3 %vm36_vm0, %v757_v15  ;;  %v1041_v12 = vld [vmem:[#allocation3] ss:$0 sm:$0xff] }
 0x7fa   :  { %v770_v20 = vpop.f32.mrf.mxu2  ;;  %v783_v21 = vpop.f32.mrf.mxu3 }
 0x7fb   :  { %v789_v13 = vadd.f32 %v1012_v11, %v770_v20  ;;  %812 = vrot.lane.b32.xlu0 %v770_v20, %s1127_s16  ;;  %v837_v33 = vadd.f32 %v1303_v40, %v783_v21  ;;  %v858_v40 = vld [vmem:[%s1545_s4 + $0x20] sm:$0xff] }
 0x7fc   :  { %880 = vmatpush.msra.mxu0 %v858_v40 }
 0x7fd   :  { %v1013_v26 = vmul.f32 -1.442695, %v789_v13 }
 0x7fe   :  { %881 = vmatpush.msra.mxu0 %v857_v39 }
 0x7ff   :  { %1112 = vpow2.f32 %v1013_v26 }
 0x800   :  { %882 = vmatpush.msra.mxu0 %v856_v41 }
 0x802   :  { %v772_v16 = vpop.f32.mrf.mxu2  ;;  %v785_v17 = vpop.f32.mrf.mxu3  ;;  %883 = vmatpush.msra.mxu0 %v855_v43 }
 0x804   :  { %884 = vmatpush.msra.mxu0 %v854_v45 }
 0x805   :  { %v1113_v18 = vpop.eup %1112 }
 0x806   :  { %v793_v19 = vadd.f32 1.0, %v1113_v18 }
 0x808   :  { %1114 = vrcp.f32 %v793_v19  ;;  %v805_v25 = vand.u32 2147483648, %v793_v19  ;;  %v803_v28 = vand.u32 2147483647, %v793_v19  ;;  %vm799_vm10 = vweird.f32 %v793_v19 }
 0x80a   :  { %v806_v31 = vor.u32 1.1754944e-38, %v805_v25  ;;  %vm804_vm12 = vcmp.eq.f32.partialorder %v803_v28, 8.507059e+37 }
 0x80e   :  { %v1115_v23 = vpop.eup %1114 }
 0x80f   :  { %v795_v22 = vmul.f32 %v1115_v23, %v793_v19  ;;  %vm800_vm9 = vweird.f32 %v1115_v23 }
 0x810   :  { %vm801_vm11 = vmor %vm799_vm10, %vm800_vm9 }
 0x811   :  { %v796_v24 = vsub.f32 1.0, %v795_v22 }
 0x813   :  { %v797_v27 = vmul.f32 %v1115_v23, %v796_v24 }
 0x815   :  { %v798_v29 = vadd.f32 %v1115_v23, %v797_v27 }
 0x817   :  { %v802_v32 = vsel %vm801_vm11, %v1115_v23, %v798_v29 }
 0x818   :  { %v807_v34 = vsel %vm804_vm12, %v806_v31, %v802_v32 }
 0x819   :  { %v838_v35 = vmul.f32 %v837_v33, %v807_v34 }
 0x81b   :  { %v839_v51 = vadd.f32 %v1016_v50, %v838_v35 }
 0x86d   :  { %v813_v44 = vpop.permute.xlu0 %812 }
 0x86e   :  { %v815_v46 = vadd.f32 %v1014_v42, %v813_v44 }
 0x870   :  { %v1015_v47 = vmul.f32 -1.442695, %v815_v46 }
 0x872   :  { %1116 = vpow2.f32 %v1015_v47 }
 0x878   :  { %v1117_v48 = vpop.eup %1116 }
 0x879   :  { %v819_v49 = vadd.f32 1.0, %v1117_v48 }
 0x87b   :  { %1118 = vrcp.f32 %v819_v49  ;;  %v831_v55 = vand.u32 2147483648, %v819_v49  ;;  %v829_v57 = vand.u32 2147483647, %v819_v49  ;;  %vm825_vm14 = vweird.f32 %v819_v49 }
 0x87c   :  { %1120 = vtanh.f32 %v839_v51 }
 0x87d   :  { %v832_v60 = vor.u32 1.1754944e-38, %v831_v55  ;;  %vm830_vm1 = vcmp.eq.f32.partialorder %v829_v57, 8.507059e+37 }
 0x881   :  { %v1119_v52 = vpop.eup %1118 }
 0x882   :  { %v821_v53 = vmul.f32 %v1119_v52, %v819_v49  ;;  %vm826_vm13 = vweird.f32 %v1119_v52  ;;  %v1121_v58 = vpop.eup %1120 }
 0x883   :  { %vm827_vm15 = vmor %vm825_vm14, %vm826_vm13  ;;  %v841_v61 = vsub.f32 %v1478_v14, %v1121_v58 }
 0x884   :  { %v822_v54 = vsub.f32 1.0, %v821_v53 }
 0x886   :  { %v823_v56 = vmul.f32 %v1119_v52, %v822_v54 }
 0x888   :  { %v824_v59 = vadd.f32 %v1119_v52, %v823_v56 }
 0x88a   :  { %v828_v63 = vsel %vm827_vm15, %v1119_v52, %v824_v59 }
 0x88b   :  { %v833_v0 = vsel %vm830_vm1, %v832_v60, %v828_v63 }
 0x88c   :  { %v842_v2 = vmul.f32 %v841_v61, %v833_v0 }
 0x88e   :  { %v843_v4 = vadd.f32 %v1121_v58, %v842_v2 }
 0x890   :  { %v849_v5 = vsel %vm848_vm2, %v843_v4, %v1478_v14 }
 0x891   :  { %850 = vst.msk [vmem:[#allocation2] sm:$0xff] %vm36_vm0, %v849_v5  ;;  %1017 = vmatmul.msk.f32.vlgmr.msra.gmra.mxu0 %vm36_vm0, %v849_v5 }
 0x90e   :  { %v886_v30 = vpop.f32.mrf.mxu0 }
 0x90f   :  { %v887_v8 = vadd.f32 %v1039_v62, %v886_v30 }
 0x911   :  { %v889_v3 = vmax.f32 %v887_v8, 0.0 }
 0x913   :  { %v894_v10 = vmul.f32 %v1040_v9, %v889_v3 }
 0x915   :  { %v895_v6 = vsel %vm36_vm0, %v894_v10, 0.0 }
 0x916   :  { %896 = vadd.xlane.f32.xlu1 %v895_v6 }
 0x989   :  { %v897_v14 = vpop.xlane.xlu1 %896 }
 0x98a   :  { %v902_v15 = vadd.f32 %v1041_v12, %v897_v14 }
 0x98c   :  { %v903_v11 = vmax.f32 %v902_v15, 0.0 }
 0x98e   :  { %v1018_v20 = vmul.f32 -1.442695, %v903_v11 }
 0x990   :  { %1122 = vpow2.f32 %v1018_v20 }
 0x996   :  { %v1123_v21 = vpop.eup %1122 }
 0x997   :  { %v907_v13 = vadd.f32 1.0, %v1123_v21 }
 0x999   :  { %1124 = vrcp.f32 %v907_v13  ;;  %v919_v18 = vand.u32 2147483648, %v907_v13  ;;  %v917_v23 = vand.u32 2147483647, %v907_v13  ;;  %vm913_vm3 = vweird.f32 %v907_v13 }
 0x99b   :  { %v920_v24 = vor.u32 1.1754944e-38, %v919_v18  ;;  %vm918_vm4 = vcmp.eq.f32.partialorder %v917_v23, 8.507059e+37 }
 0x99f   :  { %v1125_v26 = vpop.eup %1124 }
 0x9a0   :  { %v909_v16 = vmul.f32 %v1125_v26, %v907_v13  ;;  %vm914_vm6 = vweird.f32 %v1125_v26 }
 0x9a1   :  { %vm915_vm0 = vmor %vm913_vm3, %vm914_vm6 }
 0x9a2   :  { %v910_v17 = vsub.f32 1.0, %v909_v16 }
 0x9a4   :  { %v911_v19 = vmul.f32 %v1125_v26, %v910_v17 }
 0x9a6   :  { %v912_v22 = vadd.f32 %v1125_v26, %v911_v19 }
 0x9a8   :  { %v916_v25 = vsel %vm915_vm0, %v1125_v26, %v912_v22 }
 0x9a9   :  { %v921_v27 = vsel %vm918_vm4, %v920_v24, %v916_v25 }
 0x9aa   :  { %v923_v28 = vmul.f32 100.0, %v921_v27 }
 0x9ac   :  { %925 = vst.msk [vmem:[%s1548_s8] sm:$0xff] %vm924_vm5, %v923_v28 }

</bundles_post_ra>
